<compile_context>
chip_gen: v6e
topology: v6e:2x2x1
jax: 0.10.0
libtpu: 0.0.40
codegen_flags: <defaults>
</compile_context>

<pallas_src>
import functools

import jax
import jax.numpy as jnp
from jax import lax
from jax.experimental import pallas as pl
from jax.experimental.pallas import tpu as pltpu


def _round_up(x, m):
    return (x + m - 1) // m * m


def conv_stats_kernel(x_ref, w_ref, z_ref, sum_ref, ssq_ref, acc_ref,
                      *, H, W, kh, kw, stride, Ho, Wo):
    """One grid step == one image (one M-tile of Ho*Wo output rows).

    x_ref:   (1, H*W, Cin)     bf16  raw input image, spatial dims flattened
    w_ref:   (kh*kw, Cin, Cp)  bf16  per-tap weight slabs (Cout padded to Cp)
    z_ref:   (1, Ho, Wo, Cp)   f32   pre-BN conv output tile
    sum_ref: (1, Cp)           f32   running per-channel sum   (grid-resident)
    ssq_ref: (1, Cp)           f32   running per-channel sum^2 (grid-resident)
    acc_ref: (Ho, Wo, Cp)      f32   VMEM accumulator scratch
    """
    # ReLU once on the raw input (not on 9x-duplicated patches).
    x = jnp.maximum(x_ref[0], 0).astype(jnp.bfloat16)          # (H*W, Cin)

    acc_ref[...] = jnp.zeros_like(acc_ref)
    # Conv = sum over kh*kw taps of a channel matmul, shifted spatially.
    for t in range(kh * kw):
        di, dj = t // kw, t % kw
        # (H*W, Cin) @ (Cin, Cp) on the MXU with f32 accumulation.
        y = jnp.dot(x, w_ref[t], preferred_element_type=jnp.float32)
        y = y.reshape(H, W, -1)                                 # (H, W, Cp)
        acc_ref[...] += y[di:di + stride * (Ho - 1) + 1:stride,
                          dj:dj + stride * (Wo - 1) + 1:stride, :]

    z = acc_ref[...]                                            # (Ho, Wo, Cp)
    z_ref[0] = z

    # Single-pass BN statistics accumulated across the (arbitrary) grid axis.
    @pl.when(pl.program_id(0) == 0)
    def _():
        sum_ref[...] = jnp.zeros_like(sum_ref)
        ssq_ref[...] = jnp.zeros_like(ssq_ref)

    sum_ref[...] += jnp.sum(z, axis=(0, 1)).reshape(1, -1)
    ssq_ref[...] += jnp.sum(z * z, axis=(0, 1)).reshape(1, -1)


def bn_apply_kernel(z_ref, sum_ref, ssq_ref, gamma_ref, beta_ref, o_ref,
                    *, m_total, eps):
    """Normalize pass: folded affine, one FMA per element."""
    inv_m = 1.0 / m_total
    mean = sum_ref[...] * inv_m                                  # (1, Cp)
    var = ssq_ref[...] * inv_m - mean * mean                     # biased var, f32
    inv = lax.rsqrt(var + eps)
    scale = gamma_ref[...] * inv
    shift = beta_ref[...] - mean * scale
    o_ref[...] = (z_ref[...] * scale.reshape(1, 1, 1, -1)
                  + shift.reshape(1, 1, 1, -1)).astype(o_ref.dtype)


def relu_conv_bn(x_nchw, conv_w, gamma, beta, *, stride=1, eps=1e-3):
    """x_nchw: (N, Cin, H, W); conv_w: (Cout, Cin, kh, kw) (PyTorch layout)."""
    N, Cin, H, W = x_nchw.shape
    Cout, _, kh, kw = conv_w.shape
    Ho = (H - kh) // stride + 1
    Wo = (W - kw) // stride + 1
    Cp = _round_up(Cout, 128)        # lane-dense output stores / MXU columns
    M = N * Ho * Wo                  # true global row count for BN statistics

    # Layout glue (no data duplication): NCHW -> NHWC -> (N, H*W, Cin), bf16.
    x_flat = jnp.transpose(x_nchw, (0, 2, 3, 1)).reshape(N, H * W, Cin)
    x_flat = x_flat.astype(jnp.bfloat16)

    # Conv weight (Cout, Cin, kh, kw) -> (kh*kw, Cin, Cp), bf16, zero-padded.
    w_t = jnp.transpose(conv_w, (2, 3, 1, 0)).reshape(kh * kw, Cin, Cout)
    w_t = jnp.pad(w_t, ((0, 0), (0, 0), (0, Cp - Cout))).astype(jnp.bfloat16)

    gamma_p = jnp.pad(gamma.astype(jnp.float32), (0, Cp - Cout)).reshape(1, Cp)
    beta_p = jnp.pad(beta.astype(jnp.float32), (0, Cp - Cout)).reshape(1, Cp)

    # --- Pass 1: ReLU + conv (MXU) + per-channel sum / sum-of-squares ---
    kernel1 = functools.partial(conv_stats_kernel, H=H, W=W, kh=kh, kw=kw,
                                stride=stride, Ho=Ho, Wo=Wo)
    z, ch_sum, ch_ssq = pl.pallas_call(
        kernel1,
        out_shape=(
            jax.ShapeDtypeStruct((N, Ho, Wo, Cp), jnp.float32),
            jax.ShapeDtypeStruct((1, Cp), jnp.float32),
            jax.ShapeDtypeStruct((1, Cp), jnp.float32),
        ),
        grid_spec=pltpu.PrefetchScalarGridSpec(
            num_scalar_prefetch=0,
            grid=(N,),
            in_specs=[
                pl.BlockSpec((1, H * W, Cin), lambda n: (n, 0, 0)),
                pl.BlockSpec((kh * kw, Cin, Cp), lambda n: (0, 0, 0)),
            ],
            out_specs=[
                pl.BlockSpec((1, Ho, Wo, Cp), lambda n: (n, 0, 0, 0)),
                pl.BlockSpec((1, Cp), lambda n: (0, 0)),
                pl.BlockSpec((1, Cp), lambda n: (0, 0)),
            ],
            scratch_shapes=[pltpu.VMEM((Ho, Wo, Cp), jnp.float32)],
        ),
        compiler_params=pltpu.CompilerParams(
            # BN sums accumulate across this axis -> must stay "arbitrary".
            dimension_semantics=("arbitrary",)),
        cost_estimate=pl.CostEstimate(
            flops=2 * N * H * W * Cin * Cp * kh * kw,
            transcendentals=0,
            bytes_accessed=x_flat.size * 2 + w_t.size * 2 + N * Ho * Wo * Cp * 4),
    )(x_flat, w_t)

    # --- Pass 2: normalize with folded affine (scale, shift) ---
    kernel2 = functools.partial(bn_apply_kernel, m_total=float(M), eps=eps)
    out_p = pl.pallas_call(
        kernel2,
        out_shape=jax.ShapeDtypeStruct((N, Ho, Wo, Cp), jnp.float32),
        grid_spec=pltpu.PrefetchScalarGridSpec(
            num_scalar_prefetch=0,
            grid=(N,),
            in_specs=[
                pl.BlockSpec((1, Ho, Wo, Cp), lambda n: (n, 0, 0, 0)),
                pl.BlockSpec((1, Cp), lambda n: (0, 0)),
                pl.BlockSpec((1, Cp), lambda n: (0, 0)),
                pl.BlockSpec((1, Cp), lambda n: (0, 0)),
                pl.BlockSpec((1, Cp), lambda n: (0, 0)),
            ],
            out_specs=pl.BlockSpec((1, Ho, Wo, Cp), lambda n: (n, 0, 0, 0)),
        ),
        compiler_params=pltpu.CompilerParams(
            dimension_semantics=("parallel",)),
        cost_estimate=pl.CostEstimate(
            flops=2 * N * Ho * Wo * Cp,
            transcendentals=Cp,
            bytes_accessed=2 * N * Ho * Wo * Cp * 4),
    )(z, ch_sum, ch_ssq, gamma_p, beta_p)

    # Slice off channel padding and return NCHW like the PyTorch module.
    return jnp.transpose(out_p[:, :, :, :Cout], (0, 3, 1, 2))


def _reference(x, conv_w, gamma, beta, stride, eps):
    xr = jnp.maximum(x, 0.0)
    z = lax.conv_general_dilated(
        xr, conv_w, window_strides=(stride, stride), padding="VALID",
        dimension_numbers=("NCHW", "OIHW", "NCHW"))
    mean = jnp.mean(z, axis=(0, 2, 3), keepdims=True)
    var = jnp.mean((z - mean) ** 2, axis=(0, 2, 3), keepdims=True)
    zn = (z - mean) * lax.rsqrt(var + eps)
    return zn * gamma.reshape(1, -1, 1, 1) + beta.reshape(1, -1, 1, 1)


if __name__ == "__main__":
    key = jax.random.PRNGKey(0)
    k_x, k_w = jax.random.split(key)

    # ReluConvBn(in_channels=4, out_channels=8, kernel_size=3, stride=1)
    N, Cin, H, W = 2, 4, 16, 16
    Cout, kh, kw, stride = 8, 3, 3, 1

    x = jax.random.normal(k_x, (N, Cin, H, W), dtype=jnp.float32)
    conv_w = jax.random.normal(k_w, (Cout, Cin, kh, kw), dtype=jnp.float32) * 0.1
    gamma = jnp.ones((Cout,), dtype=jnp.float32)   # BatchNorm2d init: weight=1
    beta = jnp.zeros((Cout,), dtype=jnp.float32)   # BatchNorm2d init: bias=0

    y = relu_conv_bn(x, conv_w, gamma, beta, stride=stride, eps=1e-3)
    jax.block_until_ready(y)

    Ho = (H - kh) // stride + 1
    Wo = (W - kw) // stride + 1
    assert y.shape == (N, Cout, Ho, Wo)

    # Sanity check vs. a pure-JAX reference (loose tol: bf16 matmul operands).
    y_ref = _reference(x, conv_w, gamma, beta, stride, 1e-3)
    err = float(jnp.max(jnp.abs(y - y_ref)))
    assert err < 0.15, f"max abs err {err}"

    print("KERNEL_OK")
</pallas_src>

<mosaic_0001>
module attributes {stable_mosaic.version = 11 : i64} {
  func.func @conv_stats_kernel(%arg0: i32, %arg1: memref<1x256x4xbf16, #tpu.memory_space<vmem>>, %arg2: memref<9x4x128xbf16, #tpu.memory_space<vmem>>, %arg3: memref<1x14x14x128xf32, #tpu.memory_space<vmem>>, %arg4: memref<1x128xf32, #tpu.memory_space<vmem>>, %arg5: memref<1x128xf32, #tpu.memory_space<vmem>>, %arg6: memref<14x14x128xf32, #tpu.memory_space<vmem>>) attributes {dimension_semantics = [#tpu.dimension_semantics<arbitrary>], iteration_bounds = array<i64: 2>, scalar_prefetch = 0 : i64, scratch_operands = 1 : i64, tpu.core_type = #tpu.core_type<tc>, window_params = [{transform_indices = @transform_0, window_bounds = array<i64: 1, 256, 4>}, {pipeline_mode = #tpu.pipeline_mode<synchronous>, transform_indices = @transform_1, window_bounds = array<i64: 9, 4, 128>}, {transform_indices = @transform_2, window_bounds = array<i64: 1, 14, 14, 128>}, {pipeline_mode = #tpu.pipeline_mode<synchronous>, transform_indices = @transform_3, window_bounds = array<i64: 1, 128>}, {pipeline_mode = #tpu.pipeline_mode<synchronous>, transform_indices = @transform_4, window_bounds = array<i64: 1, 128>}]} {
    %c0 = arith.constant 0 : index
    %c0_0 = arith.constant 0 : index
    %c0_1 = arith.constant 0 : index
    %0 = vector.load %arg1[%c0, %c0_0, %c0_1] : memref<1x256x4xbf16, #tpu.memory_space<vmem>>, vector<1x256x4xbf16>
    %1 = vector.shape_cast %0 : vector<1x256x4xbf16> to vector<256x4xbf16>
    %cst = arith.constant 0.000000e+00 : bf16
    %2 = vector.broadcast %cst : bf16 to vector<256x4xbf16>
    %3 = arith.maximumf %1, %2 : vector<256x4xbf16>
    %cst_2 = arith.constant 0.000000e+00 : f32
    %4 = vector.broadcast %cst_2 : f32 to vector<14x14x128xf32>
    %c0_3 = arith.constant 0 : index
    %c0_4 = arith.constant 0 : index
    %c0_5 = arith.constant 0 : index
    %5 = vector.load %arg6[%c0_3, %c0_4, %c0_5] : memref<14x14x128xf32, #tpu.memory_space<vmem>>, vector<14x14x128xf32>
    tpu.vector_store %arg6[%c0_3, %c0_4, %c0_5], %4 {strides = array<i32>} : memref<14x14x128xf32, #tpu.memory_space<vmem>>, vector<14x14x128xf32>,
    %c0_6 = arith.constant 0 : index
    %c0_7 = arith.constant 0 : index
    %c0_8 = arith.constant 0 : index
    %6 = vector.load %arg2[%c0_6, %c0_7, %c0_8] : memref<9x4x128xbf16, #tpu.memory_space<vmem>>, vector<1x4x128xbf16>
    %7 = vector.shape_cast %6 : vector<1x4x128xbf16> to vector<4x128xbf16>
    %cst_9 = arith.constant dense<0.000000e+00> : vector<256x128xf32>
    %8 = tpu.matmul %3, %7, %cst_9 {dimension_numbers = #tpu.dot_dimension_numbers<[1], [0], [0], [1], [0, 0, 1, 1], [], []>} : vector<256x4xbf16>, vector<4x128xbf16>, vector<256x128xf32> -> vector<256x128xf32>
    %9 = vector.shape_cast %8 : vector<256x128xf32> to vector<16x16x128xf32>
    %c0_10 = arith.constant 0 : index
    %c0_11 = arith.constant 0 : index
    %c0_12 = arith.constant 0 : index
    %10 = vector.load %arg6[%c0_10, %c0_11, %c0_12] : memref<14x14x128xf32, #tpu.memory_space<vmem>>, vector<14x14x128xf32>
    %11 = vector.extract_strided_slice %9 {offsets = [0, 0, 0], sizes = [14, 14, 128], strides = [1, 1, 1]} : vector<16x16x128xf32> to vector<14x14x128xf32>
    %12 = arith.addf %10, %11 : vector<14x14x128xf32>
    %c0_13 = arith.constant 0 : index
    %c0_14 = arith.constant 0 : index
    %c0_15 = arith.constant 0 : index
    %13 = vector.load %arg6[%c0_13, %c0_14, %c0_15] : memref<14x14x128xf32, #tpu.memory_space<vmem>>, vector<14x14x128xf32>
    tpu.vector_store %arg6[%c0_13, %c0_14, %c0_15], %12 {strides = array<i32>} : memref<14x14x128xf32, #tpu.memory_space<vmem>>, vector<14x14x128xf32>,
    %c1 = arith.constant 1 : index
    %c0_16 = arith.constant 0 : index
    %c0_17 = arith.constant 0 : index
    %14 = vector.load %arg2[%c1, %c0_16, %c0_17] : memref<9x4x128xbf16, #tpu.memory_space<vmem>>, vector<1x4x128xbf16>
    %15 = vector.shape_cast %14 : vector<1x4x128xbf16> to vector<4x128xbf16>
    %cst_18 = arith.constant dense<0.000000e+00> : vector<256x128xf32>
    %16 = tpu.matmul %3, %15, %cst_18 {dimension_numbers = #tpu.dot_dimension_numbers<[1], [0], [0], [1], [0, 0, 1, 1], [], []>} : vector<256x4xbf16>, vector<4x128xbf16>, vector<256x128xf32> -> vector<256x128xf32>
    %17 = vector.shape_cast %16 : vector<256x128xf32> to vector<16x16x128xf32>
    %c0_19 = arith.constant 0 : index
    %c0_20 = arith.constant 0 : index
    %c0_21 = arith.constant 0 : index
    %18 = vector.load %arg6[%c0_19, %c0_20, %c0_21] : memref<14x14x128xf32, #tpu.memory_space<vmem>>, vector<14x14x128xf32>
    %19 = vector.extract_strided_slice %17 {offsets = [0, 1, 0], sizes = [14, 14, 128], strides = [1, 1, 1]} : vector<16x16x128xf32> to vector<14x14x128xf32>
    %20 = arith.addf %18, %19 : vector<14x14x128xf32>
    %c0_22 = arith.constant 0 : index
    %c0_23 = arith.constant 0 : index
    %c0_24 = arith.constant 0 : index
    %21 = vector.load %arg6[%c0_22, %c0_23, %c0_24] : memref<14x14x128xf32, #tpu.memory_space<vmem>>, vector<14x14x128xf32>
    tpu.vector_store %arg6[%c0_22, %c0_23, %c0_24], %20 {strides = array<i32>} : memref<14x14x128xf32, #tpu.memory_space<vmem>>, vector<14x14x128xf32>,
    %c2 = arith.constant 2 : index
    %c0_25 = arith.constant 0 : index
    %c0_26 = arith.constant 0 : index
    %22 = vector.load %arg2[%c2, %c0_25, %c0_26] : memref<9x4x128xbf16, #tpu.memory_space<vmem>>, vector<1x4x128xbf16>
    %23 = vector.shape_cast %22 : vector<1x4x128xbf16> to vector<4x128xbf16>
    %cst_27 = arith.constant dense<0.000000e+00> : vector<256x128xf32>
    %24 = tpu.matmul %3, %23, %cst_27 {dimension_numbers = #tpu.dot_dimension_numbers<[1], [0], [0], [1], [0, 0, 1, 1], [], []>} : vector<256x4xbf16>, vector<4x128xbf16>, vector<256x128xf32> -> vector<256x128xf32>
    %25 = vector.shape_cast %24 : vector<256x128xf32> to vector<16x16x128xf32>
    %c0_28 = arith.constant 0 : index
    %c0_29 = arith.constant 0 : index
    %c0_30 = arith.constant 0 : index
    %26 = vector.load %arg6[%c0_28, %c0_29, %c0_30] : memref<14x14x128xf32, #tpu.memory_space<vmem>>, vector<14x14x128xf32>
    %27 = vector.extract_strided_slice %25 {offsets = [0, 2, 0], sizes = [14, 14, 128], strides = [1, 1, 1]} : vector<16x16x128xf32> to vector<14x14x128xf32>
    %28 = arith.addf %26, %27 : vector<14x14x128xf32>
    %c0_31 = arith.constant 0 : index
    %c0_32 = arith.constant 0 : index
    %c0_33 = arith.constant 0 : index
    %29 = vector.load %arg6[%c0_31, %c0_32, %c0_33] : memref<14x14x128xf32, #tpu.memory_space<vmem>>, vector<14x14x128xf32>
    tpu.vector_store %arg6[%c0_31, %c0_32, %c0_33], %28 {strides = array<i32>} : memref<14x14x128xf32, #tpu.memory_space<vmem>>, vector<14x14x128xf32>,
    %c3 = arith.constant 3 : index
    %c0_34 = arith.constant 0 : index
    %c0_35 = arith.constant 0 : index
    %30 = vector.load %arg2[%c3, %c0_34, %c0_35] : memref<9x4x128xbf16, #tpu.memory_space<vmem>>, vector<1x4x128xbf16>
    %31 = vector.shape_cast %30 : vector<1x4x128xbf16> to vector<4x128xbf16>
    %cst_36 = arith.constant dense<0.000000e+00> : vector<256x128xf32>
    %32 = tpu.matmul %3, %31, %cst_36 {dimension_numbers = #tpu.dot_dimension_numbers<[1], [0], [0], [1], [0, 0, 1, 1], [], []>} : vector<256x4xbf16>, vector<4x128xbf16>, vector<256x128xf32> -> vector<256x128xf32>
    %33 = vector.shape_cast %32 : vector<256x128xf32> to vector<16x16x128xf32>
    %c0_37 = arith.constant 0 : index
    %c0_38 = arith.constant 0 : index
    %c0_39 = arith.constant 0 : index
    %34 = vector.load %arg6[%c0_37, %c0_38, %c0_39] : memref<14x14x128xf32, #tpu.memory_space<vmem>>, vector<14x14x128xf32>
    %35 = vector.extract_strided_slice %33 {offsets = [1, 0, 0], sizes = [14, 14, 128], strides = [1, 1, 1]} : vector<16x16x128xf32> to vector<14x14x128xf32>
    %36 = arith.addf %34, %35 : vector<14x14x128xf32>
    %c0_40 = arith.constant 0 : index
    %c0_41 = arith.constant 0 : index
    %c0_42 = arith.constant 0 : index
    %37 = vector.load %arg6[%c0_40, %c0_41, %c0_42] : memref<14x14x128xf32, #tpu.memory_space<vmem>>, vector<14x14x128xf32>
    tpu.vector_store %arg6[%c0_40, %c0_41, %c0_42], %36 {strides = array<i32>} : memref<14x14x128xf32, #tpu.memory_space<vmem>>, vector<14x14x128xf32>,
    %c4 = arith.constant 4 : index
    %c0_43 = arith.constant 0 : index
    %c0_44 = arith.constant 0 : index
    %38 = vector.load %arg2[%c4, %c0_43, %c0_44] : memref<9x4x128xbf16, #tpu.memory_space<vmem>>, vector<1x4x128xbf16>
    %39 = vector.shape_cast %38 : vector<1x4x128xbf16> to vector<4x128xbf16>
    %cst_45 = arith.constant dense<0.000000e+00> : vector<256x128xf32>
    %40 = tpu.matmul %3, %39, %cst_45 {dimension_numbers = #tpu.dot_dimension_numbers<[1], [0], [0], [1], [0, 0, 1, 1], [], []>} : vector<256x4xbf16>, vector<4x128xbf16>, vector<256x128xf32> -> vector<256x128xf32>
    %41 = vector.shape_cast %40 : vector<256x128xf32> to vector<16x16x128xf32>
    %c0_46 = arith.constant 0 : index
    %c0_47 = arith.constant 0 : index
    %c0_48 = arith.constant 0 : index
    %42 = vector.load %arg6[%c0_46, %c0_47, %c0_48] : memref<14x14x128xf32, #tpu.memory_space<vmem>>, vector<14x14x128xf32>
    %43 = vector.extract_strided_slice %41 {offsets = [1, 1, 0], sizes = [14, 14, 128], strides = [1, 1, 1]} : vector<16x16x128xf32> to vector<14x14x128xf32>
    %44 = arith.addf %42, %43 : vector<14x14x128xf32>
    %c0_49 = arith.constant 0 : index
    %c0_50 = arith.constant 0 : index
    %c0_51 = arith.constant 0 : index
    %45 = vector.load %arg6[%c0_49, %c0_50, %c0_51] : memref<14x14x128xf32, #tpu.memory_space<vmem>>, vector<14x14x128xf32>
    tpu.vector_store %arg6[%c0_49, %c0_50, %c0_51], %44 {strides = array<i32>} : memref<14x14x128xf32, #tpu.memory_space<vmem>>, vector<14x14x128xf32>,
    %c5 = arith.constant 5 : index
    %c0_52 = arith.constant 0 : index
    %c0_53 = arith.constant 0 : index
    %46 = vector.load %arg2[%c5, %c0_52, %c0_53] : memref<9x4x128xbf16, #tpu.memory_space<vmem>>, vector<1x4x128xbf16>
    %47 = vector.shape_cast %46 : vector<1x4x128xbf16> to vector<4x128xbf16>
    %cst_54 = arith.constant dense<0.000000e+00> : vector<256x128xf32>
    %48 = tpu.matmul %3, %47, %cst_54 {dimension_numbers = #tpu.dot_dimension_numbers<[1], [0], [0], [1], [0, 0, 1, 1], [], []>} : vector<256x4xbf16>, vector<4x128xbf16>, vector<256x128xf32> -> vector<256x128xf32>
    %49 = vector.shape_cast %48 : vector<256x128xf32> to vector<16x16x128xf32>
    %c0_55 = arith.constant 0 : index
    %c0_56 = arith.constant 0 : index
    %c0_57 = arith.constant 0 : index
    %50 = vector.load %arg6[%c0_55, %c0_56, %c0_57] : memref<14x14x128xf32, #tpu.memory_space<vmem>>, vector<14x14x128xf32>
    %51 = vector.extract_strided_slice %49 {offsets = [1, 2, 0], sizes = [14, 14, 128], strides = [1, 1, 1]} : vector<16x16x128xf32> to vector<14x14x128xf32>
    %52 = arith.addf %50, %51 : vector<14x14x128xf32>
    %c0_58 = arith.constant 0 : index
    %c0_59 = arith.constant 0 : index
    %c0_60 = arith.constant 0 : index
    %53 = vector.load %arg6[%c0_58, %c0_59, %c0_60] : memref<14x14x128xf32, #tpu.memory_space<vmem>>, vector<14x14x128xf32>
    tpu.vector_store %arg6[%c0_58, %c0_59, %c0_60], %52 {strides = array<i32>} : memref<14x14x128xf32, #tpu.memory_space<vmem>>, vector<14x14x128xf32>,
    %c6 = arith.constant 6 : index
    %c0_61 = arith.constant 0 : index
    %c0_62 = arith.constant 0 : index
    %54 = vector.load %arg2[%c6, %c0_61, %c0_62] : memref<9x4x128xbf16, #tpu.memory_space<vmem>>, vector<1x4x128xbf16>
    %55 = vector.shape_cast %54 : vector<1x4x128xbf16> to vector<4x128xbf16>
    %cst_63 = arith.constant dense<0.000000e+00> : vector<256x128xf32>
    %56 = tpu.matmul %3, %55, %cst_63 {dimension_numbers = #tpu.dot_dimension_numbers<[1], [0], [0], [1], [0, 0, 1, 1], [], []>} : vector<256x4xbf16>, vector<4x128xbf16>, vector<256x128xf32> -> vector<256x128xf32>
    %57 = vector.shape_cast %56 : vector<256x128xf32> to vector<16x16x128xf32>
    %c0_64 = arith.constant 0 : index
    %c0_65 = arith.constant 0 : index
    %c0_66 = arith.constant 0 : index
    %58 = vector.load %arg6[%c0_64, %c0_65, %c0_66] : memref<14x14x128xf32, #tpu.memory_space<vmem>>, vector<14x14x128xf32>
    %59 = vector.extract_strided_slice %57 {offsets = [2, 0, 0], sizes = [14, 14, 128], strides = [1, 1, 1]} : vector<16x16x128xf32> to vector<14x14x128xf32>
    %60 = arith.addf %58, %59 : vector<14x14x128xf32>
    %c0_67 = arith.constant 0 : index
    %c0_68 = arith.constant 0 : index
    %c0_69 = arith.constant 0 : index
    %61 = vector.load %arg6[%c0_67, %c0_68, %c0_69] : memref<14x14x128xf32, #tpu.memory_space<vmem>>, vector<14x14x128xf32>
    tpu.vector_store %arg6[%c0_67, %c0_68, %c0_69], %60 {strides = array<i32>} : memref<14x14x128xf32, #tpu.memory_space<vmem>>, vector<14x14x128xf32>,
    %c7 = arith.constant 7 : index
    %c0_70 = arith.constant 0 : index
    %c0_71 = arith.constant 0 : index
    %62 = vector.load %arg2[%c7, %c0_70, %c0_71] : memref<9x4x128xbf16, #tpu.memory_space<vmem>>, vector<1x4x128xbf16>
    %63 = vector.shape_cast %62 : vector<1x4x128xbf16> to vector<4x128xbf16>
    %cst_72 = arith.constant dense<0.000000e+00> : vector<256x128xf32>
    %64 = tpu.matmul %3, %63, %cst_72 {dimension_numbers = #tpu.dot_dimension_numbers<[1], [0], [0], [1], [0, 0, 1, 1], [], []>} : vector<256x4xbf16>, vector<4x128xbf16>, vector<256x128xf32> -> vector<256x128xf32>
    %65 = vector.shape_cast %64 : vector<256x128xf32> to vector<16x16x128xf32>
    %c0_73 = arith.constant 0 : index
    %c0_74 = arith.constant 0 : index
    %c0_75 = arith.constant 0 : index
    %66 = vector.load %arg6[%c0_73, %c0_74, %c0_75] : memref<14x14x128xf32, #tpu.memory_space<vmem>>, vector<14x14x128xf32>
    %67 = vector.extract_strided_slice %65 {offsets = [2, 1, 0], sizes = [14, 14, 128], strides = [1, 1, 1]} : vector<16x16x128xf32> to vector<14x14x128xf32>
    %68 = arith.addf %66, %67 : vector<14x14x128xf32>
    %c0_76 = arith.constant 0 : index
    %c0_77 = arith.constant 0 : index
    %c0_78 = arith.constant 0 : index
    %69 = vector.load %arg6[%c0_76, %c0_77, %c0_78] : memref<14x14x128xf32, #tpu.memory_space<vmem>>, vector<14x14x128xf32>
    tpu.vector_store %arg6[%c0_76, %c0_77, %c0_78], %68 {strides = array<i32>} : memref<14x14x128xf32, #tpu.memory_space<vmem>>, vector<14x14x128xf32>,
    %c8 = arith.constant 8 : index
    %c0_79 = arith.constant 0 : index
    %c0_80 = arith.constant 0 : index
    %70 = vector.load %arg2[%c8, %c0_79, %c0_80] : memref<9x4x128xbf16, #tpu.memory_space<vmem>>, vector<1x4x128xbf16>
    %71 = vector.shape_cast %70 : vector<1x4x128xbf16> to vector<4x128xbf16>
    %cst_81 = arith.constant dense<0.000000e+00> : vector<256x128xf32>
    %72 = tpu.matmul %3, %71, %cst_81 {dimension_numbers = #tpu.dot_dimension_numbers<[1], [0], [0], [1], [0, 0, 1, 1], [], []>} : vector<256x4xbf16>, vector<4x128xbf16>, vector<256x128xf32> -> vector<256x128xf32>
    %73 = vector.shape_cast %72 : vector<256x128xf32> to vector<16x16x128xf32>
    %c0_82 = arith.constant 0 : index
    %c0_83 = arith.constant 0 : index
    %c0_84 = arith.constant 0 : index
    %74 = vector.load %arg6[%c0_82, %c0_83, %c0_84] : memref<14x14x128xf32, #tpu.memory_space<vmem>>, vector<14x14x128xf32>
    %75 = vector.extract_strided_slice %73 {offsets = [2, 2, 0], sizes = [14, 14, 128], strides = [1, 1, 1]} : vector<16x16x128xf32> to vector<14x14x128xf32>
    %76 = arith.addf %74, %75 : vector<14x14x128xf32>
    %c0_85 = arith.constant 0 : index
    %c0_86 = arith.constant 0 : index
    %c0_87 = arith.constant 0 : index
    %77 = vector.load %arg6[%c0_85, %c0_86, %c0_87] : memref<14x14x128xf32, #tpu.memory_space<vmem>>, vector<14x14x128xf32>
    tpu.vector_store %arg6[%c0_85, %c0_86, %c0_87], %76 {strides = array<i32>} : memref<14x14x128xf32, #tpu.memory_space<vmem>>, vector<14x14x128xf32>,
    %c0_88 = arith.constant 0 : index
    %c0_89 = arith.constant 0 : index
    %c0_90 = arith.constant 0 : index
    %78 = vector.load %arg6[%c0_88, %c0_89, %c0_90] : memref<14x14x128xf32, #tpu.memory_space<vmem>>, vector<14x14x128xf32>
    %c0_91 = arith.constant 0 : index
    %c0_92 = arith.constant 0 : index
    %c0_93 = arith.constant 0 : index
    %c0_94 = arith.constant 0 : index
    %79 = vector.load %arg3[%c0_91, %c0_92, %c0_93, %c0_94] : memref<1x14x14x128xf32, #tpu.memory_space<vmem>>, vector<1x14x14x128xf32>
    %80 = vector.shape_cast %79 : vector<1x14x14x128xf32> to vector<14x14x128xf32>
    %81 = vector.shape_cast %78 : vector<14x14x128xf32> to vector<1x14x14x128xf32>
    tpu.vector_store %arg3[%c0_91, %c0_92, %c0_93, %c0_94], %81 {strides = array<i32>} : memref<1x14x14x128xf32, #tpu.memory_space<vmem>>, vector<1x14x14x128xf32>,
    %c0_i32 = arith.constant 0 : i32
    %82 = arith.cmpi eq, %arg0, %c0_i32 : i32
    %83 = arith.extui %82 : i1 to i32
    %c0_i32_95 = arith.constant 0 : i32
    %84 = arith.cmpi ne, %83, %c0_i32_95 : i32
    scf.if %84 {
      %cst_106 = arith.constant 0.000000e+00 : f32
      %96 = vector.broadcast %cst_106 : f32 to vector<1x128xf32>
      %c0_107 = arith.constant 0 : index
      %c0_108 = arith.constant 0 : index
      %97 = vector.load %arg4[%c0_107, %c0_108] : memref<1x128xf32, #tpu.memory_space<vmem>>, vector<1x128xf32>
      tpu.vector_store %arg4[%c0_107, %c0_108], %96 {strides = array<i32>} : memref<1x128xf32, #tpu.memory_space<vmem>>, vector<1x128xf32>,
      %cst_109 = arith.constant 0.000000e+00 : f32
      %98 = vector.broadcast %cst_109 : f32 to vector<1x128xf32>
      %c0_110 = arith.constant 0 : index
      %c0_111 = arith.constant 0 : index
      %99 = vector.load %arg5[%c0_110, %c0_111] : memref<1x128xf32, #tpu.memory_space<vmem>>, vector<1x128xf32>
      tpu.vector_store %arg5[%c0_110, %c0_111], %98 {strides = array<i32>} : memref<1x128xf32, #tpu.memory_space<vmem>>, vector<1x128xf32>,
    } else {
    }
    %c0_96 = arith.constant 0 : index
    %c0_97 = arith.constant 0 : index
    %85 = vector.load %arg4[%c0_96, %c0_97] : memref<1x128xf32, #tpu.memory_space<vmem>>, vector<1x128xf32>
    %cst_98 = arith.constant dense<0.000000e+00> : vector<128xf32>
    %86 = vector.multi_reduction <add>, %78, %cst_98 [0, 1] : vector<14x14x128xf32> to vector<128xf32>
    %87 = vector.shape_cast %86 : vector<128xf32> to vector<1x128xf32>
    %88 = arith.addf %85, %87 : vector<1x128xf32>
    %c0_99 = arith.constant 0 : index
    %c0_100 = arith.constant 0 : index
    %89 = vector.load %arg4[%c0_99, %c0_100] : memref<1x128xf32, #tpu.memory_space<vmem>>, vector<1x128xf32>
    tpu.vector_store %arg4[%c0_99, %c0_100], %88 {strides = array<i32>} : memref<1x128xf32, #tpu.memory_space<vmem>>, vector<1x128xf32>,
    %c0_101 = arith.constant 0 : index
    %c0_102 = arith.constant 0 : index
    %90 = vector.load %arg5[%c0_101, %c0_102] : memref<1x128xf32, #tpu.memory_space<vmem>>, vector<1x128xf32>
    %91 = arith.mulf %78, %78 : vector<14x14x128xf32>
    %cst_103 = arith.constant dense<0.000000e+00> : vector<128xf32>
    %92 = vector.multi_reduction <add>, %91, %cst_103 [0, 1] : vector<14x14x128xf32> to vector<128xf32>
    %93 = vector.shape_cast %92 : vector<128xf32> to vector<1x128xf32>
    %94 = arith.addf %90, %93 : vector<1x128xf32>
    %c0_104 = arith.constant 0 : index
    %c0_105 = arith.constant 0 : index
    %95 = vector.load %arg5[%c0_104, %c0_105] : memref<1x128xf32, #tpu.memory_space<vmem>>, vector<1x128xf32>
    tpu.vector_store %arg5[%c0_104, %c0_105], %94 {strides = array<i32>} : memref<1x128xf32, #tpu.memory_space<vmem>>, vector<1x128xf32>,
    return
  }
  func.func @transform_0(%arg0: i32) -> (i32, i32, i32) {
    %c0_i32 = arith.constant 0 : i32
    %c0_i32_0 = arith.constant 0 : i32
    %c0_i32_1 = arith.constant 0 : i32
    return %arg0, %c0_i32, %c0_i32_0 : i32, i32, i32
  }
  func.func @transform_1(%arg0: i32) -> (i32, i32, i32) {
    %c0_i32 = arith.constant 0 : i32
    %c0_i32_0 = arith.constant 0 : i32
    %c0_i32_1 = arith.constant 0 : i32
    %c0_i32_2 = arith.constant 0 : i32
    return %c0_i32, %c0_i32_0, %c0_i32_1 : i32, i32, i32
  }
  func.func @transform_2(%arg0: i32) -> (i32, i32, i32, i32) {
    %c0_i32 = arith.constant 0 : i32
    %c0_i32_0 = arith.constant 0 : i32
    %c0_i32_1 = arith.constant 0 : i32
    %c0_i32_2 = arith.constant 0 : i32
    return %arg0, %c0_i32, %c0_i32_0, %c0_i32_1 : i32, i32, i32, i32
  }
  func.func @transform_3(%arg0: i32) -> (i32, i32) {
    %c0_i32 = arith.constant 0 : i32
    %c0_i32_0 = arith.constant 0 : i32
    %c0_i32_1 = arith.constant 0 : i32
    return %c0_i32, %c0_i32_0 : i32, i32
  }
  func.func @transform_4(%arg0: i32) -> (i32, i32) {
    %c0_i32 = arith.constant 0 : i32
    %c0_i32_0 = arith.constant 0 : i32
    %c0_i32_1 = arith.constant 0 : i32
    return %c0_i32, %c0_i32_0 : i32, i32
  }
}

</mosaic_0001>

<bundles_post_ra>
// kernel: tpu_custom_call.1
= control target key start
LH: loop header
LB: loop body
LE: loop exit
PB: predicated region body
PF: predicated region fallthrough
CT: control target
= control target key end

     0   :  { %10 = vsyncpa [#allocation4], 0  ;;  %s5267_s0 = inlined_call_operand.vmem [shape: bf16[2,256,4], index: 0, kind: input, shape index: {}]   ;;  %s5268_s1 = inlined_call_operand.vmem [shape: bf16[9,4,128], index: 1, kind: input, shape index: {}]   ;;  %s5269_s2 = inlined_call_operand.vmem [shape: f32[2,14,14,128], index: 2, kind: output, shape index: {0}]   ;;  %s5270_s3 = inlined_call_operand.hbm [shape: f32[1,128], index: 3, kind: output, shape index: {1}]   ;;  %s5271_s4 = inlined_call_operand.hbm [shape: f32[1,128], index: 4, kind: output, shape index: {2}]  }
   0x1   :  { %11 = vsyncpa [#allocation6], 0  ;;  %s4287_s15 = smov 0  }
   0x2 LB: > { %s4293_s16 = sadd.s32 4294967295, %s4255_s15   ;;  %p3516_p0 = scmp.ge.s32.totalorder %s4255_s15, 1  ;;  %s4255_s15 = sphi %s4287_s15, %s17_s15  }
   0x3   : > { %p159_p1 = scmp.lt.s32.totalorder %s4255_s15, 3 }
   0x5   : > { %p160_p2 = pnand %p3516_p0, %p159_p1 }
   0x6   : > { %p185_p3 = scmp.lt.s32.totalorder (!%p160_p2), %s4293_s16, 1  ;;  %p3688_p4 = scmp.ne.s32.totalorder (!%p160_p2), %s4293_s16, 0 }
   0x7   : > { %163 = sbr.rel (%p160_p2) target bundleno = 616 (0x268), region = 28 }
   0xc   : > { %v288_v0 = vld [vmem:[%s5268_s1] sm:$0x3]  ;;  %vm418_vm0 = vcmask 1041408   ;;  %v3552_v2 = vld [vmem:[%s5268_s1 + $0x2] sm:$0x3]  ;;  %s4311_s23 = scalar_select %p185_p3, %s4293_s16, 1 }
   0xd   : > { %4158 = vmatprep.subr.msk.bf16.mxu1 %vm418_vm0, %v288_v0  ;;  %v420_v1 = vsel %vm418_vm0, %v288_v0, 0  ;;  %4157 = vmatprep.subr.msk.bf16.mxu0 %vm418_vm0, %v288_v0  ;;  %v3569_v3 = vld [vmem:[%s5268_s1 + $0x4] sm:$0x3]  ;;  %vm369_vm1 = vcmask 31744   ;;  %v666_v4 = vsel %vm418_vm0, %v3552_v2, 0  ;;  %v4257_v9 = vmov 0  }
   0xe   : > { %4156 = vmatpush3.bf16.msra.mxu1 %v420_v1  ;;  %3850 = vmatpush3.bf16.msra.mxu0 %v420_v1  ;;  %s3695_s24 = sshll.u32 %s4311_s23, 7  ;;  %v1011_v5 = vsel %vm418_vm0, %v3569_v3, 0  ;;  %v3586_v50 = vld [vmem:[%s5268_s1 + $0x6] sm:$0x3]  ;;  %v3603_v52 = vld [vmem:[%s5268_s1 + $0x8] sm:$0x3] }
   0xf   : > { %4159 = vmatprep.subr.msk.bf16.mxu1 %vm418_vm0, %v3552_v2  ;;  %4160 = vmatprep.subr.msk.bf16.mxu0 %vm418_vm0, %v3569_v3  ;;  %s4319_s27 = scalar_lea.vmem %s5267_s0, %s3695_s24  ;;  %vm881_vm2 = vcmask 1046528   ;;  %vm1226_vm3 = vcmask 1045504   ;;  %s4167_s14 = smul.u32 224, %s4311_s23 }
  0x10   : > { %v212_v6 = vld [vmem:[%s4319_s27 + $0x40] sm:$0xf]  ;;  %v213_v7 = vld [vmem:[%s4319_s27 + $0x44] sm:$0xf]  ;;  %v214_v8 = vld [vmem:[%s4319_s27 + $0x48] sm:$0xf] }
  0x11   : > { %v244_v10 = vmax.bf16 %v4257_v9, %v212_v6  ;;  %v245_v11 = vmax.bf16 %v4257_v9, %v213_v7  ;;  %v215_v12 = vld [vmem:[%s4319_s27 + $0x4c] sm:$0xf]  ;;  %v246_v13 = vmax.bf16 %v4257_v9, %v214_v8  ;;  %v196_v14 = vld [vmem:[%s4319_s27] sm:$0xf]  ;;  %v197_v15 = vld [vmem:[%s4319_s27 + $0x4] sm:$0xf]  ;;  %s4967_s19 = scalar_lea.vmem %s5269_s2, %s4167_s14 }
  0x12   : > { %v247_v16 = vmax.bf16 %v4257_v9, %v215_v12  ;;  %v228_v17 = vmax.bf16 %v4257_v9, %v196_v14  ;;  %v229_v18 = vmax.bf16 %v4257_v9, %v197_v15  ;;  %v198_v19 = vld [vmem:[%s4319_s27 + $0x8] sm:$0xf]  ;;  %v199_v20 = vld [vmem:[%s4319_s27 + $0xc] sm:$0xf]  ;;  %v216_v21 = vld [vmem:[%s4319_s27 + $0x50] sm:$0xf] }
  0x13   : > { %v4338_v22 = vcombine.low %v244_v10, %v245_v11  ;;  %v230_v23 = vmax.bf16 %v4257_v9, %v198_v19  ;;  %v231_v24 = vmax.bf16 %v4257_v9, %v199_v20  ;;  %v217_v25 = vld [vmem:[%s4319_s27 + $0x54] sm:$0xf]  ;;  %v248_v26 = vmax.bf16 %v4257_v9, %v216_v21  ;;  %v218_v27 = vld [vmem:[%s4319_s27 + $0x58] sm:$0xf]  ;;  %v219_v28 = vld [vmem:[%s4319_s27 + $0x5c] sm:$0xf] }
  0x14   : > { %v4346_v29 = vcombine.low %v246_v13, %v247_v16  ;;  %v4348_v30 = vcombine.low %v228_v17, %v229_v18  ;;  %v249_v31 = vmax.bf16 %v4257_v9, %v217_v25  ;;  %v200_v32 = vld [vmem:[%s4319_s27 + $0x10] sm:$0xf]  ;;  %v201_v33 = vld [vmem:[%s4319_s27 + $0x14] sm:$0xf]  ;;  %v202_v34 = vld [vmem:[%s4319_s27 + $0x18] sm:$0xf]  ;;  %v250_v36 = vmax.bf16 %v4257_v9, %v218_v27 }
  0x15   : > { %3867 = vmatprep.mubr.msk.bf16.mxu1 %vm369_vm1, %v4338_v22  ;;  %v4356_v35 = vcombine.low %v230_v23, %v231_v24  ;;  %v232_v37 = vmax.bf16 %v4257_v9, %v200_v32  ;;  %v233_v38 = vmax.bf16 %v4257_v9, %v201_v33  ;;  %v203_v39 = vld [vmem:[%s4319_s27 + $0x1c] sm:$0xf]  ;;  %v220_v40 = vld [vmem:[%s4319_s27 + $0x60] sm:$0xf]  ;;  %v221_v41 = vld [vmem:[%s4319_s27 + $0x64] sm:$0xf]  ;;  %v251_v43 = vmax.bf16 %v4257_v9, %v219_v28 }
  0x16   : > { %3868 = vmatmul.mubr.msk.bf16.vlgmr.msra.gmra.mxu1 %vm369_vm1, %v4346_v29  ;;  %3851 = vmatprep.mubr.msk.bf16.mxu0 %vm369_vm1, %v4348_v30  ;;  %v4368_v42 = vcombine.low %v248_v26, %v249_v31  ;;  %v234_v44 = vmax.bf16 %v4257_v9, %v202_v34  ;;  %v204_v45 = vld [vmem:[%s4319_s27 + $0x20] sm:$0xf]  ;;  %v235_v47 = vmax.bf16 %v4257_v9, %v203_v39  ;;  %v205_v49 = vld [vmem:[%s4319_s27 + $0x24] sm:$0xf]  ;;  %v222_v58 = vld [vmem:[%s4319_s27 + $0x68] sm:$0xf] }
  0x17   : > { %3884 = vmatpush3.bf16.msra.mxu1 %v666_v4  ;;  %3852 = vmatmul.mubr.msk.bf16.vlgmr.msra.gmra.mxu0 %vm369_vm1, %v4356_v35  ;;  %v4375_v46 = vcombine.low %v232_v37, %v233_v38  ;;  %v252_v48 = vmax.bf16 %v4257_v9, %v220_v40  ;;  %v253_v51 = vmax.bf16 %v4257_v9, %v221_v41  ;;  %v223_v59 = vld [vmem:[%s4319_s27 + $0x6c] sm:$0xf]  ;;  %v206_v60 = vld [vmem:[%s4319_s27 + $0x28] sm:$0xf]  ;;  %v224_v63 = vld [vmem:[%s4319_s27 + $0x70] sm:$0xf] }
  0x18   : > { %3871 = vmatprep.mubr.msk.bf16.mxu1 %vm369_vm1, %v4368_v42  ;;  %3918 = vmatpush3.bf16.msra.mxu0 %v1011_v5  ;;  %v236_v53 = vmax.bf16 %v4257_v9, %v204_v45  ;;  %v237_v54 = vmax.bf16 %v4257_v9, %v205_v49  ;;  %v4393_v55 = vcombine.low %v250_v36, %v251_v43  ;;  %v207_v62 = vld [vmem:[%s4319_s27 + $0x2c] sm:$0xf]  ;;  %v225_v0 = vld [vmem:[%s4319_s27 + $0x74] sm:$0xf]  ;;  %v208_v1 = vld [vmem:[%s4319_s27 + $0x30] sm:$0xf] }
  0x19   : > { %3855 = vmatprep.mubr.msk.bf16.mxu0 %vm369_vm1, %v4375_v46  ;;  %4161 = vmatprep.subr.msk.bf16.mxu1 %vm418_vm0, %v3586_v50  ;;  %v4396_v56 = vcombine.low %v234_v44, %v235_v47  ;;  %v4398_v57 = vcombine.low %v252_v48, %v253_v51  ;;  %v209_v2 = vld [vmem:[%s4319_s27 + $0x34] sm:$0xf]  ;;  %v254_v3 = vmax.bf16 %v4257_v9, %v222_v58  ;;  %v226_v15 = vld [vmem:[%s4319_s27 + $0x78] sm:$0xf]  ;;  %v227_v16 = vld [vmem:[%s4319_s27 + $0x7c] sm:$0xf] }
  0x1a   : > { %4162 = vmatprep.subr.msk.bf16.mxu0 %vm418_vm0, %v3603_v52  ;;  %v4404_v61 = vcombine.low %v236_v53, %v237_v54  ;;  %v255_v4 = vmax.bf16 %v4257_v9, %v223_v59  ;;  %v238_v5 = vmax.bf16 %v4257_v9, %v206_v60  ;;  %v239_v6 = vmax.bf16 %v4257_v9, %v207_v62  ;;  %v210_v18 = vld [vmem:[%s4319_s27 + $0x38] sm:$0xf]  ;;  %v211_v19 = vld [vmem:[%s4319_s27 + $0x3c] sm:$0xf]  ;;  %v3620_v28 = vld [vmem:[%s5268_s1 + $0xa] sm:$0x3] }
  0x1b   : > { %v256_v7 = vmax.bf16 %v4257_v9, %v224_v63  ;;  %v257_v8 = vmax.bf16 %v4257_v9, %v225_v0  ;;  %v240_v10 = vmax.bf16 %v4257_v9, %v208_v1  ;;  %v241_v11 = vmax.bf16 %v4257_v9, %v209_v2  ;;  %v3637_v31 = vld [vmem:[%s5268_s1 + $0xc] sm:$0x3]  ;;  %v3654_v36 = vld [vmem:[%s5268_s1 + $0xe] sm:$0x3]  ;;  %v3671_v37 = vld [vmem:[%s5268_s1 + $0x10] sm:$0x3] }
  0x1c   : > { %v4427_v12 = vcombine.low %v254_v3, %v255_v4  ;;  %v4429_v13 = vcombine.low %v238_v5, %v239_v6  ;;  %v258_v20 = vmax.bf16 %v4257_v9, %v226_v15  ;;  %v259_v21 = vmax.bf16 %v4257_v9, %v227_v16 }
  0x1d   : > { %v4431_v14 = vcombine.low %v256_v7, %v257_v8  ;;  %v4435_v17 = vcombine.low %v240_v10, %v241_v11  ;;  %v242_v23 = vmax.bf16 %v4257_v9, %v210_v18  ;;  %v243_v24 = vmax.bf16 %v4257_v9, %v211_v19 }
  0x1e   : > { %3872 = vmatmul.mubr.msk.bf16.gmra.mxu1 %vm369_vm1, %v4393_v55  ;;  %v4451_v25 = vcombine.low %v258_v20, %v259_v21  ;;  %v1356_v9 = vsel %vm418_vm0, %v3586_v50, 0  ;;  %v1602_v27 = vsel %vm418_vm0, %v3603_v52, 0  ;;  %v4258_v32 = vmov 0.0  }
  0x1f   : > { %3856 = vmatmul.mubr.msk.bf16.gmra.mxu0 %vm369_vm1, %v4396_v56  ;;  %3875 = vmatprep.mubr.msk.bf16.mxu1 %vm369_vm1, %v4398_v57  ;;  %v4453_v26 = vcombine.low %v242_v23, %v243_v24  ;;  %261 = vst [vmem:[#allocation2] sm:$0x3f] %v4258_v32  ;;  %263 = vst [vmem:[#allocation2 + $0x18] sm:$0x3f] %v4258_v32  ;;  %v1946_v33 = vsel %vm418_vm0, %v3620_v28, 0  ;;  %v2290_v34 = vsel %vm418_vm0, %v3637_v31, 0 }
  0x20   : > { %3859 = vmatprep.mubr.msk.bf16.mxu0 %vm369_vm1, %v4404_v61  ;;  %265 = vst [vmem:[#allocation2 + $0x68] sm:$0x3f] %v4258_v32  ;;  %267 = vst [vmem:[#allocation2 + $0x48] sm:$0x3f] %v4258_v32  ;;  %v2536_v38 = vsel %vm418_vm0, %v3654_v36, 0  ;;  %v2880_v39 = vsel %vm418_vm0, %v3671_v37, 0 }
  0x21   : > { %269 = vst [vmem:[#allocation2 + $0x88] sm:$0x3f] %v4258_v32  ;;  %271 = vst [vmem:[#allocation2 + $0x58] sm:$0x3f] %v4258_v32 }
  0x22   : > { %273 = vst [vmem:[#allocation2 + $0x90] sm:$0x3f] %v4258_v32  ;;  %275 = vst [vmem:[#allocation2 + $0xb8] sm:$0x3f] %v4258_v32 }
  0x23   : > { %277 = vst [vmem:[#allocation2 + $0x28] sm:$0x3f] %v4258_v32  ;;  %279 = vst [vmem:[#allocation2 + $0x60] sm:$0x3f] %v4258_v32 }
  0x24   : > { %281 = vst [vmem:[#allocation2 + $0xa8] sm:$0x3f] %v4258_v32  ;;  %283 = vst [vmem:[#allocation2 + $0xa0] sm:$0x3f] %v4258_v32 }
  0x25   : > { %285 = vst [vmem:[#allocation2 + $0x10] sm:$0x3f] %v4258_v32  ;;  %287 = vst [vmem:[#allocation2 + $0x70] sm:$0x3f] %v4258_v32 }
  0x26   : > { %3876 = vmatmul.mubr.msk.bf16.gmra.mxu1 %vm369_vm1, %v4427_v12  ;;  %v582_v47 = vld [vmem:[#allocation2 + $0x18] sm:$0x3f]  ;;  %v580_v52 = vld [vmem:[#allocation2] sm:$0x3f] }
  0x27   : > { %3860 = vmatmul.mubr.msk.bf16.gmra.mxu0 %vm369_vm1, %v4429_v13  ;;  %3879 = vmatprep.mubr.msk.bf16.mxu1 %vm369_vm1, %v4431_v14  ;;  %v586_v3 = vld [vmem:[#allocation2 + $0x48] sm:$0x3f] }
  0x28   : > { %3863 = vmatprep.mubr.msk.bf16.mxu0 %vm369_vm1, %v4435_v17  ;;  %v584_v8 = vld [vmem:[#allocation2 + $0x68] sm:$0x3f] }
  0x2a   : > { %v598_v44 = vld [vmem:[#allocation2 + $0x60] sm:$0x3f]  ;;  %v596_v49 = vld [vmem:[#allocation2 + $0x28] sm:$0x3f] }
  0x2b   : > { %v602_v1 = vld [vmem:[#allocation2 + $0xa0] sm:$0x3f]  ;;  %v600_v5 = vld [vmem:[#allocation2 + $0xa8] sm:$0x3f] }
  0x2c   : > { %v606_v23 = vld [vmem:[#allocation2 + $0x70] sm:$0x3f] }
  0x2e   : > { %3880 = vmatmul.mubr.msk.bf16.gmra.mxu1 %vm369_vm1, %v4451_v25 }
  0x2f   : > { %3864 = vmatmul.mubr.msk.bf16.gmra.mxu0 %vm369_vm1, %v4453_v26  ;;  %3885 = vmatprep.mubr.msk.bf16.mxu1 %vm369_vm1, %v4348_v30 }
  0x30   : > { %3919 = vmatprep.mubr.msk.bf16.mxu0 %vm369_vm1, %v4348_v30 }
  0x36   : > { %3886 = vmatmul.mubr.msk.bf16.vlgmr.msra.gmra.mxu1 %vm369_vm1, %v4356_v35 }
  0x37   : > { %3952 = vmatpush3.bf16.msra.mxu1 %v1356_v9  ;;  %3920 = vmatmul.mubr.msk.bf16.vlgmr.msra.gmra.mxu0 %vm369_vm1, %v4356_v35  ;;  %v590_v9 = vld [vmem:[#allocation2 + $0x58] sm:$0x3f] }
  0x38   : > { %3889 = vmatprep.mubr.msk.bf16.mxu1 %vm369_vm1, %v4375_v46  ;;  %3923 = vmatprep.mubr.msk.bf16.mxu0 %vm369_vm1, %v4375_v46 }
  0x39   : > { %3986 = vmatpush3.bf16.msra.mxu0 %v1602_v27  ;;  %4163 = vmatprep.subr.msk.bf16.mxu1 %vm418_vm0, %v3620_v28  ;;  %v604_v28 = vld [vmem:[#allocation2 + $0x10] sm:$0x3f] }
  0x3a   : > { %4164 = vmatprep.subr.msk.bf16.mxu0 %vm418_vm0, %v3637_v31 }
  0x3e   : > { %3890 = vmatmul.mubr.msk.bf16.gmra.mxu1 %vm369_vm1, %v4396_v56 }
  0x3f   : > { %3924 = vmatmul.mubr.msk.bf16.gmra.mxu0 %vm369_vm1, %v4396_v56  ;;  %3893 = vmatprep.mubr.msk.bf16.mxu1 %vm369_vm1, %v4404_v61 }
  0x40   : > { %3927 = vmatprep.mubr.msk.bf16.mxu0 %vm369_vm1, %v4404_v61 }
  0x46   : > { %3894 = vmatmul.mubr.msk.bf16.gmra.mxu1 %vm369_vm1, %v4429_v13 }
  0x47   : > { %3928 = vmatmul.mubr.msk.bf16.gmra.mxu0 %vm369_vm1, %v4429_v13  ;;  %3897 = vmatprep.mubr.msk.bf16.mxu1 %vm369_vm1, %v4435_v17 }
  0x48   : > { %3931 = vmatprep.mubr.msk.bf16.mxu0 %vm369_vm1, %v4435_v17 }
  0x4e   : > { %3898 = vmatmul.mubr.msk.bf16.gmra.mxu1 %vm369_vm1, %v4453_v26 }
  0x4f   : > { %3932 = vmatmul.mubr.msk.bf16.gmra.mxu0 %vm369_vm1, %v4453_v26  ;;  %3901 = vmatprep.mubr.msk.bf16.mxu1 %vm369_vm1, %v4338_v22 }
  0x50   : > { %3935 = vmatprep.mubr.msk.bf16.mxu0 %vm369_vm1, %v4338_v22 }
  0x56   : > { %3902 = vmatmul.mubr.msk.bf16.gmra.mxu1 %vm369_vm1, %v4346_v29 }
  0x57   : > { %3936 = vmatmul.mubr.msk.bf16.gmra.mxu0 %vm369_vm1, %v4346_v29  ;;  %3905 = vmatprep.mubr.msk.bf16.mxu1 %vm369_vm1, %v4368_v42 }
  0x58   : > { %3939 = vmatprep.mubr.msk.bf16.mxu0 %vm369_vm1, %v4368_v42 }
  0x5e   : > { %3906 = vmatmul.mubr.msk.bf16.gmra.mxu1 %vm369_vm1, %v4393_v55 }
  0x5f   : > { %3940 = vmatmul.mubr.msk.bf16.gmra.mxu0 %vm369_vm1, %v4393_v55  ;;  %3909 = vmatprep.mubr.msk.bf16.mxu1 %vm369_vm1, %v4398_v57 }
  0x60   : > { %3943 = vmatprep.mubr.msk.bf16.mxu0 %vm369_vm1, %v4398_v57 }
  0x66   : > { %3910 = vmatmul.mubr.msk.bf16.gmra.mxu1 %vm369_vm1, %v4427_v12 }
  0x67   : > { %3944 = vmatmul.mubr.msk.bf16.gmra.mxu0 %vm369_vm1, %v4427_v12  ;;  %3913 = vmatprep.mubr.msk.bf16.mxu1 %vm369_vm1, %v4431_v14 }
  0x68   : > { %3947 = vmatprep.mubr.msk.bf16.mxu0 %vm369_vm1, %v4431_v14 }
  0x6e   : > { %3914 = vmatmul.mubr.msk.bf16.gmra.mxu1 %vm369_vm1, %v4451_v25 }
  0x6f   : > { %3948 = vmatmul.mubr.msk.bf16.gmra.mxu0 %vm369_vm1, %v4451_v25  ;;  %3953 = vmatprep.mubr.msk.bf16.mxu1 %vm369_vm1, %v4348_v30 }
  0x70   : > { %3987 = vmatprep.mubr.msk.bf16.mxu0 %vm369_vm1, %v4348_v30 }
  0x76   : > { %3954 = vmatmul.mubr.msk.bf16.vlgmr.msra.gmra.mxu1 %vm369_vm1, %v4356_v35 }
  0x77   : > { %4020 = vmatpush3.bf16.msra.mxu1 %v1946_v33  ;;  %3988 = vmatmul.mubr.msk.bf16.vlgmr.msra.gmra.mxu0 %vm369_vm1, %v4356_v35  ;;  %v588_v33 = vld [vmem:[#allocation2 + $0x88] sm:$0x3f] }
  0x78   : > { %3957 = vmatprep.mubr.msk.bf16.mxu1 %vm369_vm1, %v4375_v46  ;;  %3991 = vmatprep.mubr.msk.bf16.mxu0 %vm369_vm1, %v4375_v46 }
  0x79   : > { %4054 = vmatpush3.bf16.msra.mxu0 %v2290_v34  ;;  %4165 = vmatprep.subr.msk.bf16.mxu1 %vm418_vm0, %v3654_v36 }
  0x7a   : > { %4166 = vmatprep.subr.msk.bf16.mxu0 %vm418_vm0, %v3671_v37 }
  0x7e   : > { %3958 = vmatmul.mubr.msk.bf16.gmra.mxu1 %vm369_vm1, %v4396_v56 }
  0x7f   : > { %3992 = vmatmul.mubr.msk.bf16.gmra.mxu0 %vm369_vm1, %v4396_v56  ;;  %3961 = vmatprep.mubr.msk.bf16.mxu1 %vm369_vm1, %v4404_v61 }
  0x80   : > { %3995 = vmatprep.mubr.msk.bf16.mxu0 %vm369_vm1, %v4404_v61 }
  0x86   : > { %3962 = vmatmul.mubr.msk.bf16.gmra.mxu1 %vm369_vm1, %v4429_v13 }
  0x87   : > { %3996 = vmatmul.mubr.msk.bf16.gmra.mxu0 %vm369_vm1, %v4429_v13  ;;  %3965 = vmatprep.mubr.msk.bf16.mxu1 %vm369_vm1, %v4435_v17 }
  0x88   : > { %3999 = vmatprep.mubr.msk.bf16.mxu0 %vm369_vm1, %v4435_v17 }
  0x8e   : > { %3966 = vmatmul.mubr.msk.bf16.gmra.mxu1 %vm369_vm1, %v4453_v26 }
  0x8f   : > { %4000 = vmatmul.mubr.msk.bf16.gmra.mxu0 %vm369_vm1, %v4453_v26  ;;  %3969 = vmatprep.mubr.msk.bf16.mxu1 %vm369_vm1, %v4338_v22 }
  0x90   : > { %4003 = vmatprep.mubr.msk.bf16.mxu0 %vm369_vm1, %v4338_v22 }
  0x96   : > { %3970 = vmatmul.mubr.msk.bf16.gmra.mxu1 %vm369_vm1, %v4346_v29 }
  0x97   : > { %4004 = vmatmul.mubr.msk.bf16.gmra.mxu0 %vm369_vm1, %v4346_v29  ;;  %3973 = vmatprep.mubr.msk.bf16.mxu1 %vm369_vm1, %v4368_v42 }
  0x98   : > { %4007 = vmatprep.mubr.msk.bf16.mxu0 %vm369_vm1, %v4368_v42 }
  0x9e   : > { %3974 = vmatmul.mubr.msk.bf16.gmra.mxu1 %vm369_vm1, %v4393_v55 }
  0x9f   : > { %4008 = vmatmul.mubr.msk.bf16.gmra.mxu0 %vm369_vm1, %v4393_v55  ;;  %3977 = vmatprep.mubr.msk.bf16.mxu1 %vm369_vm1, %v4398_v57 }
  0xa0   : > { %4011 = vmatprep.mubr.msk.bf16.mxu0 %vm369_vm1, %v4398_v57 }
  0xa6   : > { %3978 = vmatmul.mubr.msk.bf16.gmra.mxu1 %vm369_vm1, %v4427_v12 }
  0xa7   : > { %4012 = vmatmul.mubr.msk.bf16.gmra.mxu0 %vm369_vm1, %v4427_v12  ;;  %3981 = vmatprep.mubr.msk.bf16.mxu1 %vm369_vm1, %v4431_v14 }
  0xa8   : > { %4015 = vmatprep.mubr.msk.bf16.mxu0 %vm369_vm1, %v4431_v14 }
  0xae   : > { %3982 = vmatmul.mubr.msk.bf16.gmra.mxu1 %vm369_vm1, %v4451_v25 }
  0xaf   : > { %4016 = vmatmul.mubr.msk.bf16.gmra.mxu0 %vm369_vm1, %v4451_v25  ;;  %4021 = vmatprep.mubr.msk.bf16.mxu1 %vm369_vm1, %v4348_v30 }
  0xb0   : > { %4055 = vmatprep.mubr.msk.bf16.mxu0 %vm369_vm1, %v4348_v30 }
  0xb6   : > { %4022 = vmatmul.mubr.msk.bf16.vlgmr.msra.gmra.mxu1 %vm369_vm1, %v4356_v35 }
  0xb7   : > { %4088 = vmatpush3.bf16.msra.mxu1 %v2536_v38  ;;  %4056 = vmatmul.mubr.msk.bf16.vlgmr.msra.gmra.mxu0 %vm369_vm1, %v4356_v35 }
  0xb8   : > { %4025 = vmatprep.mubr.msk.bf16.mxu1 %vm369_vm1, %v4375_v46  ;;  %4059 = vmatprep.mubr.msk.bf16.mxu0 %vm369_vm1, %v4375_v46 }
  0xb9   : > { %4122 = vmatpush3.bf16.msra.mxu0 %v2880_v39 }
  0xbe   : > { %4026 = vmatmul.mubr.msk.bf16.gmra.mxu1 %vm369_vm1, %v4396_v56 }
  0xbf   : > { %4060 = vmatmul.mubr.msk.bf16.gmra.mxu0 %vm369_vm1, %v4396_v56  ;;  %4029 = vmatprep.mubr.msk.bf16.mxu1 %vm369_vm1, %v4404_v61 }
  0xc0   : > { %4063 = vmatprep.mubr.msk.bf16.mxu0 %vm369_vm1, %v4404_v61 }
  0xc6   : > { %4030 = vmatmul.mubr.msk.bf16.gmra.mxu1 %vm369_vm1, %v4429_v13 }
  0xc7   : > { %4064 = vmatmul.mubr.msk.bf16.gmra.mxu0 %vm369_vm1, %v4429_v13  ;;  %4033 = vmatprep.mubr.msk.bf16.mxu1 %vm369_vm1, %v4435_v17 }
  0xc8   : > { %4067 = vmatprep.mubr.msk.bf16.mxu0 %vm369_vm1, %v4435_v17 }
  0xce   : > { %4034 = vmatmul.mubr.msk.bf16.gmra.mxu1 %vm369_vm1, %v4453_v26 }
  0xcf   : > { %4068 = vmatmul.mubr.msk.bf16.gmra.mxu0 %vm369_vm1, %v4453_v26  ;;  %4037 = vmatprep.mubr.msk.bf16.mxu1 %vm369_vm1, %v4338_v22 }
  0xd0   : > { %4071 = vmatprep.mubr.msk.bf16.mxu0 %vm369_vm1, %v4338_v22 }
  0xd6   : > { %v4645_v40 = vpop.f32.mrf.mxu1  ;;  %4038 = vmatmul.mubr.msk.bf16.gmra.mxu1 %vm369_vm1, %v4346_v29 }
  0xd7   : > { %v4649_v41 = vpop.f32.mrf.mxu0  ;;  %4072 = vmatmul.mubr.msk.bf16.gmra.mxu0 %vm369_vm1, %v4346_v29  ;;  %4041 = vmatprep.mubr.msk.bf16.mxu1 %vm369_vm1, %v4368_v42 }
  0xd8   : > { %v4655_v43 = vpop.f32.mrf.mxu1  ;;  %4075 = vmatprep.mubr.msk.bf16.mxu0 %vm369_vm1, %v4368_v42 }
  0xd9   : > { %v4659_v45 = vpop.f32.mrf.mxu0 }
  0xda   : > { %v3870_v48 = vpop.f32.mrf.mxu1 }
  0xdb   : > { %v626_v50 = vadd.f32 %v3870_v48, %v598_v44  ;;  %v3854_v51 = vpop.f32.mrf.mxu0 }
  0xdc   : > { %v610_v53 = vadd.f32 %v3854_v51, %v582_v47  ;;  %v523_v54 = vpop.f32.mrf.mxu1 }
  0xdd   : > { %654 = vst [vmem:[#allocation2 + $0x60] sm:$0x3f] %v626_v50  ;;  %v624_v58 = vadd.f32 %v596_v49, %v523_v54  ;;  %v459_v59 = vpop.f32.mrf.mxu0  ;;  %v594_v50 = vld [vmem:[#allocation2 + $0xb8] sm:$0x3f] }
  0xde   : > { %638 = vst [vmem:[#allocation2 + $0x18] sm:$0x3f] %v610_v53  ;;  %v608_v60 = vadd.f32 %v580_v52, %v459_v59  ;;  %v4661_v62 = vpop.f32.mrf.mxu1  ;;  %4042 = vmatmul.mubr.msk.bf16.gmra.mxu1 %vm369_vm1, %v4393_v55  ;;  %v592_v53 = vld [vmem:[#allocation2 + $0x90] sm:$0x3f] }
  0xdf   : > { %652 = vst [vmem:[#allocation2 + $0x28] sm:$0x3f] %v624_v58  ;;  %v4665_v63 = vpop.f32.mrf.mxu0  ;;  %4076 = vmatmul.mubr.msk.bf16.gmra.mxu0 %vm369_vm1, %v4393_v55  ;;  %4045 = vmatprep.mubr.msk.bf16.mxu1 %vm369_vm1, %v4398_v57 }
  0xe0   : > { %636 = vst [vmem:[#allocation2] sm:$0x3f] %v608_v60  ;;  %v4671_v0 = vpop.f32.mrf.mxu1  ;;  %4079 = vmatprep.mubr.msk.bf16.mxu0 %vm369_vm1, %v4398_v57 }
  0xe1   : > { %v4675_v2 = vpop.f32.mrf.mxu0 }
  0xe2   : > { %v3874_v4 = vpop.f32.mrf.mxu1 }
  0xe3   : > { %v630_v6 = vadd.f32 %v3874_v4, %v602_v1  ;;  %v3858_v7 = vpop.f32.mrf.mxu0 }
  0xe4   : > { %v614_v10 = vadd.f32 %v3858_v7, %v586_v3  ;;  %v539_v11 = vpop.f32.mrf.mxu1 }
  0xe5   : > { %658 = vst [vmem:[#allocation2 + $0xa0] sm:$0x3f] %v630_v6  ;;  %v628_v15 = vadd.f32 %v600_v5, %v539_v11  ;;  %v475_v16 = vpop.f32.mrf.mxu0  ;;  %v828_v11 = vld [vmem:[#allocation2 + $0x18] sm:$0x3f] }
  0xe6   : > { %642 = vst [vmem:[#allocation2 + $0x48] sm:$0x3f] %v614_v10  ;;  %v612_v18 = vadd.f32 %v584_v8, %v475_v16  ;;  %v4677_v19 = vpop.f32.mrf.mxu1  ;;  %4046 = vmatmul.mubr.msk.bf16.gmra.mxu1 %vm369_vm1, %v4427_v12 }
  0xe7   : > { %656 = vst [vmem:[#allocation2 + $0xa8] sm:$0x3f] %v628_v15  ;;  %v4681_v20 = vpop.f32.mrf.mxu0  ;;  %4080 = vmatmul.mubr.msk.bf16.gmra.mxu0 %vm369_vm1, %v4427_v12  ;;  %4049 = vmatprep.mubr.msk.bf16.mxu1 %vm369_vm1, %v4431_v14 }
  0xe8   : > { %640 = vst [vmem:[#allocation2 + $0x68] sm:$0x3f] %v612_v18  ;;  %v4687_v21 = vpop.f32.mrf.mxu1  ;;  %4083 = vmatprep.mubr.msk.bf16.mxu0 %vm369_vm1, %v4431_v14 }
  0xe9   : > { %v4691_v24 = vpop.f32.mrf.mxu0 }
  0xea   : > { %v3878_v27 = vpop.f32.mrf.mxu1 }
  0xeb   : > { %v634_v31 = vadd.f32 %v3878_v27, %v606_v23  ;;  %v3862_v32 = vpop.f32.mrf.mxu0 }
  0xec   : > { %v618_v34 = vadd.f32 %v3862_v32, %v590_v9  ;;  %v555_v36 = vpop.f32.mrf.mxu1 }
  0xed   : > { %662 = vst [vmem:[#allocation2 + $0x70] sm:$0x3f] %v634_v31  ;;  %v632_v37 = vadd.f32 %v604_v28, %v555_v36  ;;  %v491_v38 = vpop.f32.mrf.mxu0  ;;  %v826_v31 = vld [vmem:[#allocation2] sm:$0x3f] }
  0xee   : > { %646 = vst [vmem:[#allocation2 + $0x58] sm:$0x3f] %v618_v34  ;;  %v616_v39 = vadd.f32 %v588_v33, %v491_v38  ;;  %v3881_v44 = vpop.f32.mrf.mxu1  ;;  %4050 = vmatmul.mubr.msk.bf16.gmra.mxu1 %vm369_vm1, %v4451_v25 }
  0xef   : > { %660 = vst [vmem:[#allocation2 + $0x10] sm:$0x3f] %v632_v37  ;;  %v4695_v47 = vpop.f32.mrf.mxu0  ;;  %4084 = vmatmul.mubr.msk.bf16.gmra.mxu0 %vm369_vm1, %v4451_v25  ;;  %4089 = vmatprep.mubr.msk.bf16.mxu1 %vm369_vm1, %v4348_v30 }
  0xf0   : > { %644 = vst [vmem:[#allocation2 + $0x88] sm:$0x3f] %v616_v39  ;;  %v568_v48 = vpop.f32.mrf.mxu1  ;;  %4123 = vmatprep.mubr.msk.bf16.mxu0 %vm369_vm1, %v4348_v30 }
  0xf1   : > { %v4703_v49 = vpop.f32.mrf.mxu0 }
  0xf2   : > { %v3882_v51 = vpop.f32.mrf.mxu1 }
  0xf3   : > { %v3866_v52 = vpop.f32.mrf.mxu0 }
  0xf4   : > { %v622_v54 = vadd.f32 %v3866_v52, %v594_v50  ;;  %v570_v58 = vpop.f32.mrf.mxu1 }
  0xf5   : > { %v507_v59 = vpop.f32.mrf.mxu0 }
  0xf6   : > { %650 = vst [vmem:[#allocation2 + $0xb8] sm:$0x3f] %v622_v54  ;;  %v620_v60 = vadd.f32 %v592_v53, %v507_v59  ;;  %v3887_v1 = vpop.f32.mrf.mxu1  ;;  %4090 = vmatmul.mubr.msk.bf16.vlgmr.msra.gmra.mxu1 %vm369_vm1, %v4356_v35  ;;  %v832_v59 = vld [vmem:[#allocation2 + $0x48] sm:$0x3f] }
  0xf7   : > { %v3921_v3 = vpop.f32.mrf.mxu0  ;;  %4124 = vmatmul.mubr.msk.bf16.vlgmr.msra.gmra.mxu0 %vm369_vm1, %v4356_v35  ;;  %4093 = vmatprep.mubr.msk.bf16.mxu1 %vm369_vm1, %v4375_v46  ;;  %v885_v7 = vrot.slane %v3887_v1, 1 }
  0xf8   : > { %648 = vst [vmem:[#allocation2 + $0x90] sm:$0x3f] %v620_v60  ;;  %v702_v30 = vpop.f32.mrf.mxu1  ;;  %4127 = vmatprep.mubr.msk.bf16.mxu0 %vm369_vm1, %v4375_v46  ;;  %v1230_v5 = vrot.slane %v3921_v3, 2 }
  0xf9   : > { %v1047_v4 = vpop.f32.mrf.mxu0  ;;  %v882_v18 = vrot.slane %v702_v30, 1 }
  0xfa   : > { %v3888_v6 = vpop.f32.mrf.mxu1  ;;  %v1227_v15 = vrot.slane %v1047_v4, 2 }
  0xfb   : > { %v886_v8 = vrot.slane %v3888_v6, 1  ;;  %v3922_v10 = vpop.f32.mrf.mxu0 }
  0xfc   : > { %v705_v16 = vpop.f32.mrf.mxu1  ;;  %v1231_v35 = vrot.slane %v3922_v10, 2 }
  0xfd   : > { %v887_v23 = vsel %vm881_vm2, %v885_v7, %v886_v8  ;;  %v955_v9 = vadd.f32 %v886_v8, %v828_v11  ;;  %v883_v27 = vrot.slane %v705_v16, 1  ;;  %v1050_v28 = vpop.f32.mrf.mxu0  ;;  %v830_v8 = vld [vmem:[#allocation2 + $0x68] sm:$0x3f] }
  0xfe   : > { %v954_v46 = vadd.f32 %v4649_v41, %v887_v23  ;;  %v1232_v32 = vsel %vm1226_vm3, %v1230_v5, %v1231_v35  ;;  %v3891_v33 = vpop.f32.mrf.mxu1  ;;  %v1228_v34 = vrot.slane %v1050_v28, 2  ;;  %4094 = vmatmul.mubr.msk.bf16.gmra.mxu1 %vm369_vm1, %v4396_v56 }
  0xff   : > { %983 = vst [vmem:[#allocation2 + $0x18] sm:$0x3f] %v955_v9  ;;  %v884_v36 = vsel %vm881_vm2, %v882_v18, %v883_v27  ;;  %v953_v37 = vadd.f32 %v883_v27, %v826_v31  ;;  %v3925_v38 = vpop.f32.mrf.mxu0  ;;  %4128 = vmatmul.mubr.msk.bf16.gmra.mxu0 %vm369_vm1, %v4396_v56  ;;  %4097 = vmatprep.mubr.msk.bf16.mxu1 %vm369_vm1, %v4404_v61  ;;  %v891_v56 = vrot.slane %v3891_v33, 1 }
 0x100   : > { %v952_v41 = vadd.f32 %v884_v36, %v4659_v45  ;;  %v4724_v39 = vadd.f32 %v1232_v32, %v954_v46  ;;  %v1229_v44 = vsel %vm1226_vm3, %v1227_v15, %v1228_v34  ;;  %v718_v48 = vpop.f32.mrf.mxu1  ;;  %4131 = vmatprep.mubr.msk.bf16.mxu0 %vm369_vm1, %v4404_v61  ;;  %v1236_v52 = vrot.slane %v3925_v38, 2 }
 0x101   : > { %981 = vst [vmem:[#allocation2] sm:$0x3f] %v953_v37  ;;  %v1063_v50 = vpop.f32.mrf.mxu0  ;;  %v888_v3 = vrot.slane %v718_v48, 1 }
 0x102   : > { %v4729_v51 = vadd.f32 %v1229_v44, %v952_v41  ;;  %v3892_v53 = vpop.f32.mrf.mxu1  ;;  %v1233_v60 = vrot.slane %v1063_v50, 2  ;;  %v836_v41 = vld [vmem:[#allocation2 + $0x58] sm:$0x3f] }
 0x103   : > { %v892_v54 = vrot.slane %v3892_v53, 1  ;;  %v3926_v58 = vpop.f32.mrf.mxu0 }
 0x104   : > { %v721_v45 = vpop.f32.mrf.mxu1  ;;  %v1237_v1 = vrot.slane %v3926_v58, 2 }
 0x105   : > { %v893_v30 = vsel %vm881_vm2, %v891_v56, %v892_v54  ;;  %v959_v4 = vadd.f32 %v892_v54, %v832_v59  ;;  %v889_v5 = vrot.slane %v721_v45, 1  ;;  %v4732_v6 = vpop.f32.mrf.mxu0  ;;  %v834_v59 = vld [vmem:[#allocation2 + $0x88] sm:$0x3f] }
 0x106   : > { %v1173_v61 = vld [vmem:[#allocation2 + $0x18] sm:$0x3f]  ;;  %v958_v7 = vadd.f32 %v4665_v63, %v893_v30  ;;  %v1238_v10 = vsel %vm1226_vm3, %v1236_v52, %v1237_v1  ;;  %v3895_v11 = vpop.f32.mrf.mxu1  ;;  %v1234_v15 = vrot.slane %v4732_v6, 2  ;;  %4098 = vmatmul.mubr.msk.bf16.gmra.mxu1 %vm369_vm1, %v4429_v13 }
 0x107   : > { %v1300_v16 = vadd.f32 %v1231_v35, %v1173_v61  ;;  %987 = vst [vmem:[#allocation2 + $0x48] sm:$0x3f] %v959_v4  ;;  %v890_v18 = vsel %vm881_vm2, %v888_v3, %v889_v5  ;;  %v957_v23 = vadd.f32 %v889_v5, %v830_v8  ;;  %v3929_v9 = vpop.f32.mrf.mxu0  ;;  %4132 = vmatmul.mubr.msk.bf16.gmra.mxu0 %vm369_vm1, %v4429_v13  ;;  %v897_v37 = vrot.slane %v3895_v11, 1 }
 0x108   : > { %4101 = vmatprep.mubr.msk.bf16.mxu1 %vm369_vm1, %v4435_v17  ;;  %v1171_v63 = vld [vmem:[#allocation2] sm:$0x3f]  ;;  %v956_v27 = vadd.f32 %v890_v18, %v4675_v2  ;;  %v4745_v28 = vadd.f32 %v1238_v10, %v958_v7  ;;  %v1235_v46 = vsel %vm1226_vm3, %v1233_v60, %v1234_v15  ;;  %v734_v31 = vpop.f32.mrf.mxu1  ;;  %4135 = vmatprep.mubr.msk.bf16.mxu0 %vm369_vm1, %v4435_v17  ;;  %v1242_v13 = vrot.slane %v3929_v9, 2 }
 0x109   : > { %1328 = vst [vmem:[#allocation2 + $0x18] sm:$0x3f] %v1300_v16  ;;  %v1298_v35 = vadd.f32 %v1228_v34, %v1171_v63  ;;  %985 = vst [vmem:[#allocation2 + $0x68] sm:$0x3f] %v957_v23  ;;  %v1079_v32 = vpop.f32.mrf.mxu0  ;;  %v894_v52 = vrot.slane %v734_v31, 1 }
 0x10a   : > { %v4750_v33 = vadd.f32 %v1235_v46, %v956_v27  ;;  %v3896_v36 = vpop.f32.mrf.mxu1  ;;  %v1239_v44 = vrot.slane %v1079_v32, 2  ;;  %v840_v63 = vld [vmem:[#allocation2 + $0xb8] sm:$0x3f] }
 0x10b   : > { %1326 = vst [vmem:[#allocation2] sm:$0x3f] %v1298_v35  ;;  %v898_v38 = vrot.slane %v3896_v36, 1  ;;  %v3930_v2 = vpop.f32.mrf.mxu0 }
 0x10c   : > { %v737_v48 = vpop.f32.mrf.mxu1  ;;  %v1243_v50 = vrot.slane %v3930_v2, 2 }
 0x10d   : > { %v899_v53 = vsel %vm881_vm2, %v897_v37, %v898_v38  ;;  %v963_v17 = vadd.f32 %v898_v38, %v836_v41  ;;  %v895_v56 = vrot.slane %v737_v48, 1  ;;  %v4753_v34 = vpop.f32.mrf.mxu0  ;;  %v838_v38 = vld [vmem:[#allocation2 + $0x90] sm:$0x3f] }
 0x10e   : > { %v1177_v54 = vld [vmem:[#allocation2 + $0x48] sm:$0x3f]  ;;  %v962_v58 = vadd.f32 %v4681_v20, %v899_v53  ;;  %v1244_v60 = vsel %vm1226_vm3, %v1242_v13, %v1243_v50  ;;  %v3899_v45 = vpop.f32.mrf.mxu1  ;;  %v1240_v3 = vrot.slane %v4753_v34, 2  ;;  %4102 = vmatmul.mubr.msk.bf16.gmra.mxu1 %vm369_vm1, %v4453_v26 }
 0x10f   : > { %v1304_v30 = vadd.f32 %v1237_v1, %v1177_v54  ;;  %991 = vst [vmem:[#allocation2 + $0x58] sm:$0x3f] %v963_v17  ;;  %v896_v4 = vsel %vm881_vm2, %v894_v52, %v895_v56  ;;  %v961_v5 = vadd.f32 %v895_v56, %v834_v59  ;;  %v3933_v6 = vpop.f32.mrf.mxu0  ;;  %4136 = vmatmul.mubr.msk.bf16.gmra.mxu0 %vm369_vm1, %v4453_v26  ;;  %v903_v23 = vrot.slane %v3899_v45, 1 }
 0x110   : > { %4105 = vmatprep.mubr.msk.bf16.mxu1 %vm369_vm1, %v4338_v22  ;;  %v1175_v20 = vld [vmem:[#allocation2 + $0x68] sm:$0x3f]  ;;  %v960_v61 = vadd.f32 %v896_v4, %v4691_v24  ;;  %v4766_v7 = vadd.f32 %v1244_v60, %v962_v58  ;;  %v1241_v8 = vsel %vm1226_vm3, %v1239_v44, %v1240_v3  ;;  %v750_v10 = vpop.f32.mrf.mxu1  ;;  %4139 = vmatprep.mubr.msk.bf16.mxu0 %vm369_vm1, %v4338_v22  ;;  %v1248_v26 = vrot.slane %v3933_v6, 2 }
 0x111   : > { %1332 = vst [vmem:[#allocation2 + $0x48] sm:$0x3f] %v1304_v30  ;;  %v1302_v1 = vadd.f32 %v1234_v15, %v1175_v20  ;;  %989 = vst [vmem:[#allocation2 + $0x88] sm:$0x3f] %v961_v5  ;;  %v1095_v11 = vpop.f32.mrf.mxu0  ;;  %v900_v35 = vrot.slane %v750_v10, 1 }
 0x112   : > { %v4771_v16 = vadd.f32 %v1241_v8, %v960_v61  ;;  %v3900_v18 = vpop.f32.mrf.mxu1  ;;  %v1245_v27 = vrot.slane %v1095_v11, 2  ;;  %v844_v5 = vld [vmem:[#allocation2 + $0x60] sm:$0x3f] }
 0x113   : > { %1330 = vst [vmem:[#allocation2 + $0x68] sm:$0x3f] %v1302_v1  ;;  %v904_v9 = vrot.slane %v3900_v18, 1  ;;  %v3934_v24 = vpop.f32.mrf.mxu0  ;;  %v842_v18 = vld [vmem:[#allocation2 + $0x28] sm:$0x3f] }
 0x114   : > { %v753_v46 = vpop.f32.mrf.mxu1  ;;  %v1249_v31 = vrot.slane %v3934_v24, 2 }
 0x115   : > { %v905_v32 = vsel %vm881_vm2, %v903_v23, %v904_v9  ;;  %v967_v22 = vadd.f32 %v904_v9, %v840_v63  ;;  %v901_v13 = vrot.slane %v753_v46, 1  ;;  %v4774_v15 = vpop.f32.mrf.mxu0 }
 0x116   : > { %v1181_v36 = vld [vmem:[#allocation2 + $0x58] sm:$0x3f]  ;;  %v966_v37 = vadd.f32 %v4695_v47, %v905_v32  ;;  %v1250_v2 = vsel %vm1226_vm3, %v1248_v26, %v1249_v31  ;;  %v3903_v41 = vpop.f32.mrf.mxu1  ;;  %v1246_v44 = vrot.slane %v4774_v15, 2  ;;  %4106 = vmatmul.mubr.msk.bf16.gmra.mxu1 %vm369_vm1, %v4346_v29 }
 0x117   : > { %v1308_v48 = vadd.f32 %v1243_v50, %v1181_v36  ;;  %995 = vst [vmem:[#allocation2 + $0xb8] sm:$0x3f] %v967_v22  ;;  %v902_v52 = vsel %vm881_vm2, %v900_v35, %v901_v13  ;;  %v965_v53 = vadd.f32 %v901_v13, %v838_v38  ;;  %v3937_v17 = vpop.f32.mrf.mxu0  ;;  %4140 = vmatmul.mubr.msk.bf16.gmra.mxu0 %vm369_vm1, %v4346_v29  ;;  %v909_v30 = vrot.slane %v3903_v41, 1 }
 0x118   : > { %4109 = vmatprep.mubr.msk.bf16.mxu1 %vm369_vm1, %v4368_v42  ;;  %v1179_v47 = vld [vmem:[#allocation2 + $0x88] sm:$0x3f]  ;;  %v964_v56 = vadd.f32 %v902_v52, %v4703_v49  ;;  %v4787_v34 = vadd.f32 %v1250_v2, %v966_v37  ;;  %v1247_v54 = vsel %vm1226_vm3, %v1245_v27, %v1246_v44  ;;  %v766_v58 = vpop.f32.mrf.mxu1  ;;  %4143 = vmatprep.mubr.msk.bf16.mxu0 %vm369_vm1, %v4368_v42  ;;  %v1254_v29 = vrot.slane %v3937_v17, 2 }
 0x119   : > { %1336 = vst [vmem:[#allocation2 + $0x58] sm:$0x3f] %v1308_v48  ;;  %v1306_v50 = vadd.f32 %v1240_v3, %v1179_v47  ;;  %993 = vst [vmem:[#allocation2 + $0x90] sm:$0x3f] %v965_v53  ;;  %v1111_v59 = vpop.f32.mrf.mxu0  ;;  %v906_v8 = vrot.slane %v766_v58, 1 }
 0x11a   : > { %v4792_v60 = vadd.f32 %v1247_v54, %v964_v56  ;;  %v3904_v45 = vpop.f32.mrf.mxu1  ;;  %v1251_v6 = vrot.slane %v1111_v59, 2  ;;  %v848_v48 = vld [vmem:[#allocation2 + $0xa0] sm:$0x3f]  ;;  %v846_v59 = vld [vmem:[#allocation2 + $0xa8] sm:$0x3f] }
 0x11b   : > { %1334 = vst [vmem:[#allocation2 + $0x88] sm:$0x3f] %v1306_v50  ;;  %v910_v4 = vrot.slane %v3904_v45, 1  ;;  %v3938_v49 = vpop.f32.mrf.mxu0 }
 0x11c   : > { %v769_v20 = vpop.f32.mrf.mxu1  ;;  %v1255_v61 = vrot.slane %v3938_v49, 2 }
 0x11d   : > { %v911_v10 = vsel %vm881_vm2, %v909_v30, %v910_v4  ;;  %v971_v42 = vadd.f32 %v910_v4, %v844_v5  ;;  %v907_v1 = vrot.slane %v769_v20, 1  ;;  %v4795_v3 = vpop.f32.mrf.mxu0 }
 0x11e   : > { %v1185_v11 = vld [vmem:[#allocation2 + $0xb8] sm:$0x3f]  ;;  %v970_v26 = vadd.f32 %v4645_v40, %v911_v10  ;;  %v1256_v23 = vsel %vm1226_vm3, %v1254_v29, %v1255_v61  ;;  %v3907_v9 = vpop.f32.mrf.mxu1  ;;  %v1252_v24 = vrot.slane %v4795_v3, 2  ;;  %4110 = vmatmul.mubr.msk.bf16.gmra.mxu1 %vm369_vm1, %v4393_v55 }
 0x11f   : > { %v1312_v63 = vadd.f32 %v1249_v31, %v1185_v11  ;;  %999 = vst [vmem:[#allocation2 + $0x60] sm:$0x3f] %v971_v42  ;;  %v908_v27 = vsel %vm881_vm2, %v906_v8, %v907_v1  ;;  %v969_v46 = vadd.f32 %v907_v1, %v842_v18  ;;  %v3941_v35 = vpop.f32.mrf.mxu0  ;;  %4144 = vmatmul.mubr.msk.bf16.gmra.mxu0 %vm369_vm1, %v4393_v55  ;;  %v915_v2 = vrot.slane %v3907_v9, 1 }
 0x120   : > { %4113 = vmatprep.mubr.msk.bf16.mxu1 %vm369_vm1, %v4398_v57  ;;  %v1183_v40 = vld [vmem:[#allocation2 + $0x90] sm:$0x3f]  ;;  %v968_v32 = vadd.f32 %v908_v27, %v4655_v43  ;;  %v4808_v22 = vadd.f32 %v1256_v23, %v970_v26  ;;  %v1253_v13 = vsel %vm1226_vm3, %v1251_v6, %v1252_v24  ;;  %v782_v15 = vpop.f32.mrf.mxu1  ;;  %4147 = vmatprep.mubr.msk.bf16.mxu0 %vm369_vm1, %v4398_v57  ;;  %v1260_v55 = vrot.slane %v3941_v35, 2 }
 0x121   : > { %1340 = vst [vmem:[#allocation2 + $0xb8] sm:$0x3f] %v1312_v63  ;;  %v1310_v31 = vadd.f32 %v1246_v44, %v1183_v40  ;;  %997 = vst [vmem:[#allocation2 + $0x28] sm:$0x3f] %v969_v46  ;;  %v1127_v36 = vpop.f32.mrf.mxu0  ;;  %v912_v47 = vrot.slane %v782_v15, 1 }
 0x122   : > { %v4813_v37 = vadd.f32 %v1253_v13, %v968_v32  ;;  %v3908_v38 = vpop.f32.mrf.mxu1  ;;  %v1257_v52 = vrot.slane %v1127_v36, 2  ;;  %v852_v23 = vld [vmem:[#allocation2 + $0x70] sm:$0x3f] }
 0x123   : > { %1338 = vst [vmem:[#allocation2 + $0x90] sm:$0x3f] %v1310_v31  ;;  %v916_v41 = vrot.slane %v3908_v38, 1  ;;  %v3942_v43 = vpop.f32.mrf.mxu0  ;;  %v850_v15 = vld [vmem:[#allocation2 + $0x10] sm:$0x3f] }
 0x124   : > { %v785_v53 = vpop.f32.mrf.mxu1  ;;  %v1261_v17 = vrot.slane %v3942_v43, 2 }
 0x125   : > { %v917_v56 = vsel %vm881_vm2, %v915_v2, %v916_v41  ;;  %v975_v57 = vadd.f32 %v916_v41, %v848_v48  ;;  %v913_v54 = vrot.slane %v785_v53, 1  ;;  %v1130_v44 = vpop.f32.mrf.mxu0 }
 0x126   : > { %v1189_v58 = vld [vmem:[#allocation2 + $0x60] sm:$0x3f]  ;;  %v974_v50 = vadd.f32 %v4661_v62, %v917_v56  ;;  %v1262_v29 = vsel %vm1226_vm3, %v1260_v55, %v1261_v17  ;;  %v3911_v45 = vpop.f32.mrf.mxu1  ;;  %v1258_v30 = vrot.slane %v1130_v44, 2  ;;  %4114 = vmatmul.mubr.msk.bf16.gmra.mxu1 %vm369_vm1, %v4427_v12 }
 0x127   : > { %v1316_v4 = vadd.f32 %v1255_v61, %v1189_v58  ;;  %1003 = vst [vmem:[#allocation2 + $0xa0] sm:$0x3f] %v975_v57  ;;  %v914_v49 = vsel %vm881_vm2, %v912_v47, %v913_v54  ;;  %v973_v5 = vadd.f32 %v913_v54, %v846_v59  ;;  %v3945_v6 = vpop.f32.mrf.mxu0  ;;  %4148 = vmatmul.mubr.msk.bf16.gmra.mxu0 %vm369_vm1, %v4427_v12  ;;  %v921_v26 = vrot.slane %v3911_v45, 1 }
 0x128   : > { %4117 = vmatprep.mubr.msk.bf16.mxu1 %vm369_vm1, %v4431_v14  ;;  %v1187_v62 = vld [vmem:[#allocation2 + $0x28] sm:$0x3f]  ;;  %v972_v20 = vadd.f32 %v914_v49, %v4671_v0  ;;  %v4826_v8 = vadd.f32 %v1262_v29, %v974_v50  ;;  %v1259_v10 = vsel %vm1226_vm3, %v1257_v52, %v1258_v30  ;;  %v798_v42 = vpop.f32.mrf.mxu1  ;;  %4151 = vmatprep.mubr.msk.bf16.mxu0 %vm369_vm1, %v4431_v14  ;;  %v1266_v12 = vrot.slane %v3945_v6, 2 }
 0x129   : > { %1344 = vst [vmem:[#allocation2 + $0x60] sm:$0x3f] %v1316_v4  ;;  %v1314_v61 = vadd.f32 %v1252_v24, %v1187_v62  ;;  %1001 = vst [vmem:[#allocation2 + $0xa8] sm:$0x3f] %v973_v5  ;;  %v1143_v1 = vpop.f32.mrf.mxu0  ;;  %v918_v46 = vrot.slane %v798_v42, 1 }
 0x12a   : > { %v4831_v3 = vadd.f32 %v1259_v10, %v972_v20  ;;  %v3912_v11 = vpop.f32.mrf.mxu1  ;;  %v1263_v9 = vrot.slane %v1143_v1, 2  ;;  %v1516_v20 = vld [vmem:[#allocation2] sm:$0x3f] }
 0x12b   : > { %1342 = vst [vmem:[#allocation2 + $0x28] sm:$0x3f] %v1314_v61  ;;  %v922_v18 = vrot.slane %v3912_v11, 1  ;;  %v3946_v0 = vpop.f32.mrf.mxu0 }
 0x12c   : > { %v801_v63 = vpop.f32.mrf.mxu1  ;;  %v1267_v27 = vrot.slane %v3946_v0, 2 }
 0x12d   : > { %v923_v35 = vsel %vm881_vm2, %v921_v26, %v922_v18  ;;  %v979_v14 = vadd.f32 %v922_v18, %v852_v23  ;;  %v919_v40 = vrot.slane %v801_v63, 1  ;;  %v1146_v24 = vpop.f32.mrf.mxu0 }
 0x12e   : > { %v1193_v32 = vld [vmem:[#allocation2 + $0xa0] sm:$0x3f]  ;;  %v978_v13 = vadd.f32 %v4677_v19, %v923_v35  ;;  %v1268_v31 = vsel %vm1226_vm3, %v1266_v12, %v1267_v27  ;;  %v3915_v36 = vpop.f32.mrf.mxu1  ;;  %v1264_v55 = vrot.slane %v1146_v24, 2  ;;  %4118 = vmatmul.mubr.msk.bf16.gmra.mxu1 %vm369_vm1, %v4451_v25  ;;  %v1520_v35 = vld [vmem:[#allocation2 + $0x68] sm:$0x3f] }
 0x12f   : > { %v1320_v38 = vadd.f32 %v1261_v17, %v1193_v32  ;;  %1007 = vst [vmem:[#allocation2 + $0x70] sm:$0x3f] %v979_v14  ;;  %v920_v2 = vsel %vm881_vm2, %v918_v46, %v919_v40  ;;  %v977_v41 = vadd.f32 %v919_v40, %v850_v15  ;;  %v3949_v43 = vpop.f32.mrf.mxu0  ;;  %4152 = vmatmul.mubr.msk.bf16.gmra.mxu0 %vm369_vm1, %v4451_v25  ;;  %v1518_v15 = vld [vmem:[#allocation2 + $0x18] sm:$0x3f] }
 0x130   : > { %v1191_v48 = vld [vmem:[#allocation2 + $0xa8] sm:$0x3f]  ;;  %v976_v19 = vadd.f32 %v920_v2, %v4687_v21  ;;  %v4842_v52 = vadd.f32 %v1268_v31, %v978_v13  ;;  %v1265_v53 = vsel %vm1226_vm3, %v1263_v9, %v1264_v55  ;;  %v814_v47 = vpop.f32.mrf.mxu1 }
 0x131   : > { %1348 = vst [vmem:[#allocation2 + $0xa0] sm:$0x3f] %v1320_v38  ;;  %v1318_v56 = vadd.f32 %v1258_v30, %v1191_v48  ;;  %1005 = vst [vmem:[#allocation2 + $0x10] sm:$0x3f] %v977_v41  ;;  %v1159_v17 = vpop.f32.mrf.mxu0 }
 0x132   : > { %v4845_v57 = vadd.f32 %v1265_v53, %v976_v19  ;;  %v3916_v54 = vpop.f32.mrf.mxu1 }
 0x133   : > { %1346 = vst [vmem:[#allocation2 + $0xa8] sm:$0x3f] %v1318_v56  ;;  %v3950_v44 = vpop.f32.mrf.mxu0 }
 0x134   : > { %v816_v58 = vpop.f32.mrf.mxu1 }
 0x135   : > { %v1161_v50 = vpop.f32.mrf.mxu0  ;;  %v1524_v58 = vld [vmem:[#allocation2 + $0x88] sm:$0x3f] }
 0x136   : > { %v1197_v25 = vld [vmem:[#allocation2 + $0x70] sm:$0x3f]  ;;  %v3955_v59 = vpop.f32.mrf.mxu1 }
 0x137   : > { %v1324_v29 = vadd.f32 %v1267_v27, %v1197_v25  ;;  %v1543_v21 = vadd.f32 %v3955_v59, %v4729_v51  ;;  %v3989_v45 = vpop.f32.mrf.mxu0 }
 0x138   : > { %v1195_v4 = vld [vmem:[#allocation2 + $0x10] sm:$0x3f]  ;;  %v1392_v49 = vpop.f32.mrf.mxu1  ;;  %v1817_v6 = vrot.slane %v3989_v45, 1  ;;  %v1522_v45 = vld [vmem:[#allocation2 + $0x48] sm:$0x3f] }
 0x139   : > { %1352 = vst [vmem:[#allocation2 + $0x70] sm:$0x3f] %v1324_v29  ;;  %v1322_v5 = vadd.f32 %v1264_v55, %v1195_v4  ;;  %v1638_v30 = vpop.f32.mrf.mxu0 }
 0x13a   : > { %v3956_v62 = vpop.f32.mrf.mxu1 }
 0x13b   : > { %1350 = vst [vmem:[#allocation2 + $0x10] sm:$0x3f] %v1322_v5  ;;  %v1544_v10 = vadd.f32 %v3956_v62, %v1516_v20  ;;  %v3990_v42 = vpop.f32.mrf.mxu0 }
 0x13c   : > { %v1394_v61 = vpop.f32.mrf.mxu1  ;;  %v1818_v1 = vrot.slane %v3990_v42, 1 }
 0x13d   : > { %1572 = vst [vmem:[#allocation2] sm:$0x3f] %v1544_v10  ;;  %v1640_v12 = vpop.f32.mrf.mxu0 }
 0x13e   : > { %v1819_v11 = vsel %vm881_vm2, %v1817_v6, %v1818_v1  ;;  %v3959_v26 = vpop.f32.mrf.mxu1 }
 0x13f   : > { %v4849_v51 = vadd.f32 %v1819_v11, %v1543_v21  ;;  %v1547_v18 = vadd.f32 %v3959_v26, %v4750_v33  ;;  %v3993_v0 = vpop.f32.mrf.mxu0 }
 0x140   : > { %v1406_v23 = vpop.f32.mrf.mxu1  ;;  %v1823_v27 = vrot.slane %v3993_v0, 1 }
 0x141   : > { %v1545_v9 = vadd.f32 %v1406_v23, %v4724_v39  ;;  %v1652_v63 = vpop.f32.mrf.mxu0 }
 0x142   : > { %v3960_v46 = vpop.f32.mrf.mxu1  ;;  %v1820_v32 = vrot.slane %v1652_v63, 1 }
 0x143   : > { %v1548_v14 = vadd.f32 %v3960_v46, %v1520_v35  ;;  %v3994_v40 = vpop.f32.mrf.mxu0 }
 0x144   : > { %v1762_v24 = vld [vmem:[#allocation2] sm:$0x3f]  ;;  %v1409_v13 = vpop.f32.mrf.mxu1  ;;  %v1824_v31 = vrot.slane %v3994_v40, 1  ;;  %v1526_v40 = vld [vmem:[#allocation2 + $0x58] sm:$0x3f] }
 0x145   : > { %v1888_v36 = vadd.f32 %v1818_v1, %v1762_v24  ;;  %1576 = vst [vmem:[#allocation2 + $0x68] sm:$0x3f] %v1548_v14  ;;  %v1546_v55 = vadd.f32 %v1518_v15, %v1409_v13  ;;  %v1655_v38 = vpop.f32.mrf.mxu0 }
 0x146   : > { %v1825_v33 = vsel %vm881_vm2, %v1823_v27, %v1824_v31  ;;  %v3963_v2 = vpop.f32.mrf.mxu1  ;;  %v1821_v41 = vrot.slane %v1655_v38, 1 }
 0x147   : > { %1916 = vst [vmem:[#allocation2] sm:$0x3f] %v1888_v36  ;;  %1574 = vst [vmem:[#allocation2 + $0x18] sm:$0x3f] %v1546_v55  ;;  %v4854_v39 = vadd.f32 %v1825_v33, %v1547_v18  ;;  %v1551_v43 = vadd.f32 %v3963_v2, %v4771_v16  ;;  %v3997_v48 = vpop.f32.mrf.mxu0 }
 0x148   : > { %v1822_v19 = vsel %vm881_vm2, %v1820_v32, %v1821_v41  ;;  %v1422_v53 = vpop.f32.mrf.mxu1  ;;  %v1829_v54 = vrot.slane %v3997_v48, 1 }
 0x149   : > { %v4858_v47 = vadd.f32 %v1822_v19, %v1545_v9  ;;  %v1549_v56 = vadd.f32 %v1422_v53, %v4745_v28  ;;  %v1668_v17 = vpop.f32.mrf.mxu0  ;;  %v1528_v9 = vld [vmem:[#allocation2 + $0x90] sm:$0x3f] }
 0x14a   : > { %v3964_v44 = vpop.f32.mrf.mxu1  ;;  %v1826_v29 = vrot.slane %v1668_v17, 1 }
 0x14b   : > { %v1552_v50 = vadd.f32 %v3964_v44, %v1524_v58  ;;  %v3998_v25 = vpop.f32.mrf.mxu0 }
 0x14c   : > { %v1766_v59 = vld [vmem:[#allocation2 + $0x68] sm:$0x3f]  ;;  %v1425_v21 = vpop.f32.mrf.mxu1  ;;  %v1830_v4 = vrot.slane %v3998_v25, 1 }
 0x14d   : > { %v1892_v16 = vadd.f32 %v1824_v31, %v1766_v59  ;;  %1580 = vst [vmem:[#allocation2 + $0x88] sm:$0x3f] %v1552_v50  ;;  %v1550_v49 = vadd.f32 %v1522_v45, %v1425_v21  ;;  %v1671_v5 = vpop.f32.mrf.mxu0 }
 0x14e   : > { %v1764_v30 = vld [vmem:[#allocation2 + $0x18] sm:$0x3f]  ;;  %v1831_v6 = vsel %vm881_vm2, %v1829_v54, %v1830_v4  ;;  %v3967_v62 = vpop.f32.mrf.mxu1  ;;  %v1827_v28 = vrot.slane %v1671_v5, 1  ;;  %v1532_v54 = vld [vmem:[#allocation2 + $0x28] sm:$0x3f] }
 0x14f   : > { %1920 = vst [vmem:[#allocation2 + $0x68] sm:$0x3f] %v1892_v16  ;;  %v1890_v20 = vadd.f32 %v1821_v41, %v1764_v30  ;;  %1578 = vst [vmem:[#allocation2 + $0x48] sm:$0x3f] %v1550_v49  ;;  %v4862_v10 = vadd.f32 %v1831_v6, %v1551_v43  ;;  %v1555_v42 = vadd.f32 %v3967_v62, %v4792_v60  ;;  %v4001_v61 = vpop.f32.mrf.mxu0 }
 0x150   : > { %v1828_v1 = vsel %vm881_vm2, %v1826_v29, %v1827_v28  ;;  %v1438_v12 = vpop.f32.mrf.mxu1  ;;  %v1835_v0 = vrot.slane %v4001_v61, 1  ;;  %v1530_v29 = vld [vmem:[#allocation2 + $0xb8] sm:$0x3f] }
 0x151   : > { %1918 = vst [vmem:[#allocation2 + $0x18] sm:$0x3f] %v1890_v20  ;;  %v4866_v11 = vadd.f32 %v1828_v1, %v1549_v56  ;;  %v1553_v26 = vadd.f32 %v1438_v12, %v4766_v7  ;;  %v1684_v18 = vpop.f32.mrf.mxu0 }
 0x152   : > { %v3968_v23 = vpop.f32.mrf.mxu1  ;;  %v1832_v35 = vrot.slane %v1684_v18, 1 }
 0x153   : > { %v1556_v63 = vadd.f32 %v3968_v23, %v1528_v9  ;;  %v4002_v27 = vpop.f32.mrf.mxu0 }
 0x154   : > { %v1770_v46 = vld [vmem:[#allocation2 + $0x88] sm:$0x3f]  ;;  %v1441_v14 = vpop.f32.mrf.mxu1  ;;  %v1836_v60 = vrot.slane %v4002_v27, 1 }
 0x155   : > { %v1896_v24 = vadd.f32 %v1830_v4, %v1770_v46  ;;  %1584 = vst [vmem:[#allocation2 + $0x90] sm:$0x3f] %v1556_v63  ;;  %v1554_v32 = vadd.f32 %v1526_v40, %v1441_v14  ;;  %v1687_v13 = vpop.f32.mrf.mxu0 }
 0x156   : > { %v1768_v15 = vld [vmem:[#allocation2 + $0x48] sm:$0x3f]  ;;  %v1837_v31 = vsel %vm881_vm2, %v1835_v0, %v1836_v60  ;;  %v3971_v36 = vpop.f32.mrf.mxu1  ;;  %v1833_v7 = vrot.slane %v1687_v13, 1 }
 0x157   : > { %1924 = vst [vmem:[#allocation2 + $0x88] sm:$0x3f] %v1896_v24  ;;  %v1894_v55 = vadd.f32 %v1827_v28, %v1768_v15  ;;  %1582 = vst [vmem:[#allocation2 + $0x58] sm:$0x3f] %v1554_v32  ;;  %v4870_v38 = vadd.f32 %v1837_v31, %v1555_v42  ;;  %v1559_v33 = vadd.f32 %v3971_v36, %v4813_v37  ;;  %v4005_v2 = vpop.f32.mrf.mxu0  ;;  %v1536_v0 = vld [vmem:[#allocation2 + $0xa8] sm:$0x3f] }
 0x158   : > { %v1834_v41 = vsel %vm881_vm2, %v1832_v35, %v1833_v7  ;;  %v1454_v43 = vpop.f32.mrf.mxu1  ;;  %v1841_v56 = vrot.slane %v4005_v2, 1  ;;  %v1534_v35 = vld [vmem:[#allocation2 + $0x60] sm:$0x3f] }
 0x159   : > { %1922 = vst [vmem:[#allocation2 + $0x48] sm:$0x3f] %v1894_v55  ;;  %v4874_v48 = vadd.f32 %v1834_v41, %v1553_v26  ;;  %v1557_v19 = vadd.f32 %v1454_v43, %v4787_v34  ;;  %v1700_v53 = vpop.f32.mrf.mxu0 }
 0x15a   : > { %v3972_v17 = vpop.f32.mrf.mxu1  ;;  %v1838_v25 = vrot.slane %v1700_v53, 1 }
 0x15b   : > { %v1560_v44 = vadd.f32 %v3972_v17, %v1532_v54  ;;  %v4006_v58 = vpop.f32.mrf.mxu0 }
 0x15c   : > { %v1774_v50 = vld [vmem:[#allocation2 + $0x90] sm:$0x3f]  ;;  %v1457_v59 = vpop.f32.mrf.mxu1  ;;  %v1842_v37 = vrot.slane %v4006_v58, 1 }
 0x15d   : > { %v1900_v21 = vadd.f32 %v1836_v60, %v1774_v50  ;;  %1588 = vst [vmem:[#allocation2 + $0x28] sm:$0x3f] %v1560_v44  ;;  %v1558_v45 = vadd.f32 %v1530_v29, %v1457_v59  ;;  %v1703_v4 = vpop.f32.mrf.mxu0 }
 0x15e   : > { %v1772_v16 = vld [vmem:[#allocation2 + $0x58] sm:$0x3f]  ;;  %v1843_v49 = vsel %vm881_vm2, %v1841_v56, %v1842_v37  ;;  %v3975_v5 = vpop.f32.mrf.mxu1  ;;  %v1839_v34 = vrot.slane %v1703_v4, 1  ;;  %v1540_v56 = vld [vmem:[#allocation2 + $0x10] sm:$0x3f] }
 0x15f   : > { %1928 = vst [vmem:[#allocation2 + $0x90] sm:$0x3f] %v1900_v21  ;;  %v1898_v30 = vadd.f32 %v1833_v7, %v1772_v16  ;;  %1586 = vst [vmem:[#allocation2 + $0xb8] sm:$0x3f] %v1558_v45  ;;  %v4878_v6 = vadd.f32 %v1843_v49, %v1559_v33  ;;  %v1563_v62 = vadd.f32 %v3975_v5, %v4831_v3  ;;  %v4009_v28 = vpop.f32.mrf.mxu0 }
 0x160   : > { %v1840_v20 = vsel %vm881_vm2, %v1838_v25, %v1839_v34  ;;  %v1470_v42 = vpop.f32.mrf.mxu1  ;;  %v1847_v26 = vrot.slane %v4009_v28, 1  ;;  %v1538_v25 = vld [vmem:[#allocation2 + $0xa0] sm:$0x3f] }
 0x161   : > { %1926 = vst [vmem:[#allocation2 + $0x58] sm:$0x3f] %v1898_v30  ;;  %v4882_v61 = vadd.f32 %v1840_v20, %v1557_v19  ;;  %v1561_v1 = vadd.f32 %v1470_v42, %v4808_v22  ;;  %v1716_v12 = vpop.f32.mrf.mxu0 }
 0x162   : > { %v3976_v18 = vpop.f32.mrf.mxu1  ;;  %v1844_v27 = vrot.slane %v1716_v12, 1 }
 0x163   : > { %v1564_v23 = vadd.f32 %v3976_v18, %v1536_v0  ;;  %v4010_v9 = vpop.f32.mrf.mxu0  ;;  %v1542_v0 = vld [vmem:[#allocation2 + $0x70] sm:$0x3f] }
 0x164   : > { %v1778_v63 = vld [vmem:[#allocation2 + $0x28] sm:$0x3f]  ;;  %v1473_v46 = vpop.f32.mrf.mxu1  ;;  %v1848_v3 = vrot.slane %v4010_v9, 1 }
 0x165   : > { %v1904_v14 = vadd.f32 %v1842_v37, %v1778_v63  ;;  %1592 = vst [vmem:[#allocation2 + $0xa8] sm:$0x3f] %v1564_v23  ;;  %v1562_v40 = vadd.f32 %v1534_v35, %v1473_v46  ;;  %v1719_v60 = vpop.f32.mrf.mxu0 }
 0x166   : > { %v1776_v24 = vld [vmem:[#allocation2 + $0xb8] sm:$0x3f]  ;;  %v1849_v32 = vsel %vm881_vm2, %v1847_v26, %v1848_v3  ;;  %v3979_v13 = vpop.f32.mrf.mxu1  ;;  %v1845_v22 = vrot.slane %v1719_v60, 1 }
 0x167   : > { %1932 = vst [vmem:[#allocation2 + $0x28] sm:$0x3f] %v1904_v14  ;;  %v1902_v15 = vadd.f32 %v1839_v34, %v1776_v24  ;;  %1590 = vst [vmem:[#allocation2 + $0x60] sm:$0x3f] %v1562_v40  ;;  %v4886_v31 = vadd.f32 %v1849_v32, %v1563_v62  ;;  %v1567_v36 = vadd.f32 %v3979_v13, %v4845_v57  ;;  %v4013_v7 = vpop.f32.mrf.mxu0 }
 0x168   : > { %v1846_v55 = vsel %vm881_vm2, %v1844_v27, %v1845_v22  ;;  %v1486_v33 = vpop.f32.mrf.mxu1  ;;  %v1853_v19 = vrot.slane %v4013_v7, 1 }
 0x169   : > { %1930 = vst [vmem:[#allocation2 + $0xb8] sm:$0x3f] %v1902_v15  ;;  %v4890_v2 = vadd.f32 %v1846_v55, %v1561_v1  ;;  %v1565_v41 = vadd.f32 %v1486_v33, %v4826_v8  ;;  %v1732_v43 = vpop.f32.mrf.mxu0 }
 0x16a   : > { %v3980_v53 = vpop.f32.mrf.mxu1  ;;  %v1850_v58 = vrot.slane %v1732_v43, 1 }
 0x16b   : > { %v1568_v17 = vadd.f32 %v3980_v53, %v1540_v56  ;;  %v4014_v54 = vpop.f32.mrf.mxu0 }
 0x16c   : > { %v1782_v44 = vld [vmem:[#allocation2 + $0xa8] sm:$0x3f]  ;;  %v1489_v50 = vpop.f32.mrf.mxu1  ;;  %v1854_v57 = vrot.slane %v4014_v54, 1 }
 0x16d   : > { %v1908_v59 = vadd.f32 %v1848_v3, %v1782_v44  ;;  %1596 = vst [vmem:[#allocation2 + $0x10] sm:$0x3f] %v1568_v17  ;;  %v1566_v29 = vadd.f32 %v1538_v25, %v1489_v50  ;;  %v1735_v37 = vpop.f32.mrf.mxu0 }
 0x16e   : > { %v1780_v21 = vld [vmem:[#allocation2 + $0x60] sm:$0x3f]  ;;  %v1855_v45 = vsel %vm881_vm2, %v1853_v19, %v1854_v57  ;;  %v3983_v4 = vpop.f32.mrf.mxu1  ;;  %v1851_v8 = vrot.slane %v1735_v37, 1 }
 0x16f   : > { %1936 = vst [vmem:[#allocation2 + $0xa8] sm:$0x3f] %v1908_v59  ;;  %v1906_v16 = vadd.f32 %v1845_v22, %v1780_v21  ;;  %1594 = vst [vmem:[#allocation2 + $0xa0] sm:$0x3f] %v1566_v29  ;;  %v4894_v49 = vadd.f32 %v1855_v45, %v1567_v36  ;;  %v4017_v5 = vpop.f32.mrf.mxu0  ;;  %v2106_v36 = vld [vmem:[#allocation2] sm:$0x3f] }
 0x170   : > { %v1852_v34 = vsel %vm881_vm2, %v1850_v58, %v1851_v8  ;;  %v1502_v30 = vpop.f32.mrf.mxu1  ;;  %v2110_v29 = vld [vmem:[#allocation2 + $0x68] sm:$0x3f]  ;;  %v2108_v5 = vld [vmem:[#allocation2 + $0x18] sm:$0x3f] }
 0x171   : > { %1934 = vst [vmem:[#allocation2 + $0x60] sm:$0x3f] %v1906_v16  ;;  %v4897_v62 = vadd.f32 %v1852_v34, %v1565_v41  ;;  %v1569_v28 = vadd.f32 %v1502_v30, %v4842_v52  ;;  %v1748_v20 = vpop.f32.mrf.mxu0 }
 0x172   : > { %v3984_v42 = vpop.f32.mrf.mxu1  ;;  %v1856_v26 = vrot.slane %v1748_v20, 1 }
 0x173   : > { %v4018_v1 = vpop.f32.mrf.mxu0 }
 0x174   : > { %v1786_v12 = vld [vmem:[#allocation2 + $0x10] sm:$0x3f]  ;;  %v1505_v18 = vpop.f32.mrf.mxu1 }
 0x175   : > { %v1912_v23 = vadd.f32 %v1854_v57, %v1786_v12  ;;  %v1570_v9 = vadd.f32 %v1542_v0, %v1505_v18  ;;  %v1751_v63 = vpop.f32.mrf.mxu0 }
 0x176   : > { %v1784_v27 = vld [vmem:[#allocation2 + $0xa0] sm:$0x3f]  ;;  %v1857_v46 = vrot.slane %v1751_v63, 1  ;;  %v4023_v35 = vpop.f32.mrf.mxu1 }
 0x177   : > { %1940 = vst [vmem:[#allocation2 + $0x10] sm:$0x3f] %v1912_v23  ;;  %v1910_v3 = vadd.f32 %v1851_v8, %v1784_v27  ;;  %1598 = vst [vmem:[#allocation2 + $0x70] sm:$0x3f] %v1570_v9  ;;  %v4057_v14 = vpop.f32.mrf.mxu0  ;;  %v2161_v13 = vrot.slane %v4023_v35, 2 }
 0x178   : > { %v1858_v40 = vsel %vm881_vm2, %v1856_v26, %v1857_v46  ;;  %v1982_v52 = vpop.f32.mrf.mxu1 }
 0x179   : > { %1938 = vst [vmem:[#allocation2 + $0xa0] sm:$0x3f] %v1910_v3  ;;  %v4901_v60 = vadd.f32 %v1858_v40, %v1569_v28  ;;  %v2326_v24 = vpop.f32.mrf.mxu0 }
 0x17a   : > { %v4024_v32 = vpop.f32.mrf.mxu1 }
 0x17b   : > { %v2162_v22 = vrot.slane %v4024_v32, 2  ;;  %v4058_v15 = vpop.f32.mrf.mxu0  ;;  %v2112_v32 = vld [vmem:[#allocation2 + $0x48] sm:$0x3f] }
 0x17c   : > { %v1984_v7 = vpop.f32.mrf.mxu1 }
 0x17d   : > { %v2163_v55 = vsel %vm1226_vm3, %v2161_v13, %v2162_v22  ;;  %v2232_v33 = vadd.f32 %v2162_v22, %v2106_v36  ;;  %v2328_v41 = vpop.f32.mrf.mxu0 }
 0x17e   : > { %v1788_v43 = vld [vmem:[#allocation2 + $0x70] sm:$0x3f]  ;;  %v2231_v19 = vadd.f32 %v2163_v55, %v4849_v51  ;;  %v4027_v53 = vpop.f32.mrf.mxu1 }
 0x17f   : > { %v1914_v56 = vadd.f32 %v1857_v46, %v1788_v43  ;;  %2260 = vst [vmem:[#allocation2] sm:$0x3f] %v2232_v33  ;;  %v4061_v17 = vpop.f32.mrf.mxu0  ;;  %v2167_v25 = vrot.slane %v4027_v53, 2  ;;  %v2114_v46 = vld [vmem:[#allocation2 + $0x88] sm:$0x3f] }
 0x180   : > { %v1996_v54 = vpop.f32.mrf.mxu1 }
 0x181   : > { %1942 = vst [vmem:[#allocation2 + $0x70] sm:$0x3f] %v1914_v56  ;;  %v2338_v44 = vpop.f32.mrf.mxu0  ;;  %v2164_v21 = vrot.slane %v1996_v54, 2 }
 0x182   : > { %v4028_v58 = vpop.f32.mrf.mxu1  ;;  %v4905_v50 = vadd.f32 %v2338_v44, %v2231_v19 }
 0x183   : > { %v2168_v57 = vrot.slane %v4028_v58, 2  ;;  %v4062_v59 = vpop.f32.mrf.mxu0 }
 0x184   : > { %v1999_v37 = vpop.f32.mrf.mxu1 }
 0x185   : > { %v2169_v45 = vsel %vm1226_vm3, %v2167_v25, %v2168_v57  ;;  %v2236_v4 = vadd.f32 %v2168_v57, %v2110_v29  ;;  %v2165_v51 = vrot.slane %v1999_v37, 2  ;;  %v2341_v8 = vpop.f32.mrf.mxu0  ;;  %v2118_v25 = vld [vmem:[#allocation2 + $0x90] sm:$0x3f] }
 0x186   : > { %v2235_v16 = vadd.f32 %v2169_v45, %v4854_v39  ;;  %v4031_v34 = vpop.f32.mrf.mxu1  ;;  %v2450_v30 = vld [vmem:[#allocation2] sm:$0x3f] }
 0x187   : > { %2264 = vst [vmem:[#allocation2 + $0x68] sm:$0x3f] %v2236_v4  ;;  %v2166_v28 = vsel %vm1226_vm3, %v2164_v21, %v2165_v51  ;;  %v2234_v20 = vadd.f32 %v2165_v51, %v2108_v5  ;;  %v2478_v42 = vadd.f32 %v2450_v30, %v2341_v8  ;;  %v4065_v1 = vpop.f32.mrf.mxu0  ;;  %v2173_v39 = vrot.slane %v4031_v34, 2  ;;  %v2116_v4 = vld [vmem:[#allocation2 + $0x58] sm:$0x3f] }
 0x188   : > { %v2233_v12 = vadd.f32 %v2166_v28, %v4858_v47  ;;  %v2012_v26 = vpop.f32.mrf.mxu1 }
 0x189   : > { %2262 = vst [vmem:[#allocation2 + $0x18] sm:$0x3f] %v2234_v20  ;;  %2506 = vst [vmem:[#allocation2] sm:$0x3f] %v2478_v42  ;;  %v2354_v18 = vpop.f32.mrf.mxu0  ;;  %v2170_v3 = vrot.slane %v2012_v26, 2 }
 0x18a   : > { %v4032_v0 = vpop.f32.mrf.mxu1  ;;  %v4911_v23 = vadd.f32 %v2354_v18, %v2235_v16  ;;  %v4913_v9 = vadd.f32 %v4061_v17, %v2233_v12 }
 0x18b   : > { %v2174_v63 = vrot.slane %v4032_v0, 2  ;;  %v4066_v27 = vpop.f32.mrf.mxu0 }
 0x18c   : > { %v2015_v35 = vpop.f32.mrf.mxu1 }
 0x18d   : > { %v2175_v14 = vsel %vm1226_vm3, %v2173_v39, %v2174_v63  ;;  %v2240_v40 = vadd.f32 %v2174_v63, %v2114_v46  ;;  %v2171_v52 = vrot.slane %v2015_v35, 2  ;;  %v2357_v47 = vpop.f32.mrf.mxu0  ;;  %v2122_v46 = vld [vmem:[#allocation2 + $0x28] sm:$0x3f] }
 0x18e   : > { %v2239_v24 = vadd.f32 %v2175_v14, %v4862_v10  ;;  %v4035_v13 = vpop.f32.mrf.mxu1  ;;  %v2454_v22 = vld [vmem:[#allocation2 + $0x68] sm:$0x3f] }
 0x18f   : > { %2268 = vst [vmem:[#allocation2 + $0x88] sm:$0x3f] %v2240_v40  ;;  %v2172_v15 = vsel %vm1226_vm3, %v2170_v3, %v2171_v52  ;;  %v2238_v36 = vadd.f32 %v2171_v52, %v2112_v32  ;;  %v2482_v7 = vadd.f32 %v2454_v22, %v2357_v47  ;;  %v4069_v55 = vpop.f32.mrf.mxu0  ;;  %v2179_v54 = vrot.slane %v4035_v13, 2  ;;  %v2120_v47 = vld [vmem:[#allocation2 + $0xb8] sm:$0x3f] }
 0x190   : > { %v2452_v33 = vld [vmem:[#allocation2 + $0x18] sm:$0x3f]  ;;  %v2237_v41 = vadd.f32 %v2172_v15, %v4866_v11  ;;  %v2028_v43 = vpop.f32.mrf.mxu1 }
 0x191   : > { %v2480_v19 = vadd.f32 %v4062_v59, %v2452_v33  ;;  %2266 = vst [vmem:[#allocation2 + $0x48] sm:$0x3f] %v2238_v36  ;;  %2510 = vst [vmem:[#allocation2 + $0x68] sm:$0x3f] %v2482_v7  ;;  %v2370_v53 = vpop.f32.mrf.mxu0  ;;  %v2176_v29 = vrot.slane %v2028_v43, 2 }
 0x192   : > { %v4036_v56 = vpop.f32.mrf.mxu1  ;;  %v4919_v17 = vadd.f32 %v2370_v53, %v2239_v24  ;;  %v4921_v10 = vadd.f32 %v4065_v1, %v2237_v41 }
 0x193   : > { %2508 = vst [vmem:[#allocation2 + $0x18] sm:$0x3f] %v2480_v19  ;;  %v2180_v44 = vrot.slane %v4036_v56, 2  ;;  %v4070_v58 = vpop.f32.mrf.mxu0 }
 0x194   : > { %v2031_v57 = vpop.f32.mrf.mxu1 }
 0x195   : > { %v2181_v37 = vsel %vm1226_vm3, %v2179_v54, %v2180_v44  ;;  %v2244_v11 = vadd.f32 %v2180_v44, %v2118_v25  ;;  %v2177_v21 = vrot.slane %v2031_v57, 2  ;;  %v2373_v59 = vpop.f32.mrf.mxu0  ;;  %v2126_v25 = vld [vmem:[#allocation2 + $0xa8] sm:$0x3f] }
 0x196   : > { %v2243_v45 = vadd.f32 %v2181_v37, %v4870_v38  ;;  %v4039_v51 = vpop.f32.mrf.mxu1  ;;  %v2458_v8 = vld [vmem:[#allocation2 + $0x88] sm:$0x3f] }
 0x197   : > { %2272 = vst [vmem:[#allocation2 + $0x90] sm:$0x3f] %v2244_v11  ;;  %v2178_v16 = vsel %vm1226_vm3, %v2176_v29, %v2177_v21  ;;  %v2242_v5 = vadd.f32 %v2177_v21, %v2116_v4  ;;  %v2486_v34 = vadd.f32 %v2458_v8, %v2373_v59  ;;  %v4073_v30 = vpop.f32.mrf.mxu0  ;;  %v2185_v0 = vrot.slane %v4039_v51, 2  ;;  %v2124_v59 = vld [vmem:[#allocation2 + $0x60] sm:$0x3f] }
 0x198   : > { %v2456_v28 = vld [vmem:[#allocation2 + $0x48] sm:$0x3f]  ;;  %v2241_v20 = vadd.f32 %v2178_v16, %v4874_v48  ;;  %v2044_v42 = vpop.f32.mrf.mxu1 }
 0x199   : > { %v2484_v1 = vadd.f32 %v4066_v27, %v2456_v28  ;;  %2270 = vst [vmem:[#allocation2 + $0x58] sm:$0x3f] %v2242_v5  ;;  %2514 = vst [vmem:[#allocation2 + $0x88] sm:$0x3f] %v2486_v34  ;;  %v2386_v12 = vpop.f32.mrf.mxu0  ;;  %v2182_v3 = vrot.slane %v2044_v42, 2 }
 0x19a   : > { %v4040_v26 = vpop.f32.mrf.mxu1  ;;  %v4927_v18 = vadd.f32 %v2386_v12, %v2243_v45  ;;  %v4929_v38 = vadd.f32 %v4069_v55, %v2241_v20 }
 0x19b   : > { %2512 = vst [vmem:[#allocation2 + $0x48] sm:$0x3f] %v2484_v1  ;;  %v2186_v39 = vrot.slane %v4040_v26, 2  ;;  %v4074_v63 = vpop.f32.mrf.mxu0 }
 0x19c   : > { %v2047_v35 = vpop.f32.mrf.mxu1 }
 0x19d   : > { %v2187_v14 = vsel %vm1226_vm3, %v2185_v0, %v2186_v39  ;;  %v2248_v48 = vadd.f32 %v2186_v39, %v2122_v46  ;;  %v2183_v40 = vrot.slane %v2047_v35, 2  ;;  %v2389_v27 = vpop.f32.mrf.mxu0  ;;  %v2130_v46 = vld [vmem:[#allocation2 + $0x10] sm:$0x3f] }
 0x19e   : > { %v2247_v52 = vadd.f32 %v2187_v14, %v4878_v6  ;;  %v4043_v24 = vpop.f32.mrf.mxu1  ;;  %v2462_v32 = vld [vmem:[#allocation2 + $0x90] sm:$0x3f] }
 0x19f   : > { %2276 = vst [vmem:[#allocation2 + $0x28] sm:$0x3f] %v2248_v48  ;;  %v2184_v13 = vsel %vm1226_vm3, %v2182_v3, %v2183_v40  ;;  %v2246_v22 = vadd.f32 %v2183_v40, %v2120_v47  ;;  %v2490_v15 = vadd.f32 %v2462_v32, %v2389_v27  ;;  %v4077_v36 = vpop.f32.mrf.mxu0  ;;  %v2191_v56 = vrot.slane %v4043_v24, 2  ;;  %v2128_v27 = vld [vmem:[#allocation2 + $0xa0] sm:$0x3f] }
 0x1a0   : > { %v2460_v7 = vld [vmem:[#allocation2 + $0x58] sm:$0x3f]  ;;  %v2245_v55 = vadd.f32 %v2184_v13, %v4882_v61  ;;  %v2060_v33 = vpop.f32.mrf.mxu1 }
 0x1a1   : > { %v2488_v41 = vadd.f32 %v4070_v58, %v2460_v7  ;;  %2274 = vst [vmem:[#allocation2 + $0xb8] sm:$0x3f] %v2246_v22  ;;  %2518 = vst [vmem:[#allocation2 + $0x90] sm:$0x3f] %v2490_v15  ;;  %v2402_v43 = vpop.f32.mrf.mxu0  ;;  %v2188_v29 = vrot.slane %v2060_v33, 2 }
 0x1a2   : > { %v4044_v19 = vpop.f32.mrf.mxu1  ;;  %v4935_v53 = vadd.f32 %v2402_v43, %v2247_v52  ;;  %v4937_v6 = vadd.f32 %v4073_v30, %v2245_v55 }
 0x1a3   : > { %2516 = vst [vmem:[#allocation2 + $0x58] sm:$0x3f] %v2488_v41  ;;  %v2192_v54 = vrot.slane %v4044_v19, 2  ;;  %v4078_v44 = vpop.f32.mrf.mxu0 }
 0x1a4   : > { %v2063_v57 = vpop.f32.mrf.mxu1 }
 0x1a5   : > { %v2193_v37 = vsel %vm1226_vm3, %v2191_v56, %v2192_v54  ;;  %v2252_v61 = vadd.f32 %v2192_v54, %v2126_v25  ;;  %v2189_v11 = vrot.slane %v2063_v57, 2  ;;  %v2405_v58 = vpop.f32.mrf.mxu0 }
 0x1a6   : > { %v2251_v21 = vadd.f32 %v2193_v37, %v4886_v31  ;;  %v4047_v45 = vpop.f32.mrf.mxu1  ;;  %v2466_v4 = vld [vmem:[#allocation2 + $0x28] sm:$0x3f] }
 0x1a7   : > { %2280 = vst [vmem:[#allocation2 + $0xa8] sm:$0x3f] %v2252_v61  ;;  %v2190_v51 = vsel %vm1226_vm3, %v2188_v29, %v2189_v11  ;;  %v2250_v8 = vadd.f32 %v2189_v11, %v2124_v59  ;;  %v2494_v16 = vadd.f32 %v2466_v4, %v2405_v58  ;;  %v4081_v5 = vpop.f32.mrf.mxu0  ;;  %v2197_v26 = vrot.slane %v4047_v45, 2  ;;  %v2132_v29 = vld [vmem:[#allocation2 + $0x70] sm:$0x3f] }
 0x1a8   : > { %v2464_v34 = vld [vmem:[#allocation2 + $0xb8] sm:$0x3f]  ;;  %v2249_v30 = vadd.f32 %v2190_v51, %v4890_v2  ;;  %v2076_v28 = vpop.f32.mrf.mxu1 }
 0x1a9   : > { %v2492_v20 = vadd.f32 %v4074_v63, %v2464_v34  ;;  %2278 = vst [vmem:[#allocation2 + $0x60] sm:$0x3f] %v2250_v8  ;;  %2522 = vst [vmem:[#allocation2 + $0x28] sm:$0x3f] %v2494_v16  ;;  %v2418_v42 = vpop.f32.mrf.mxu0  ;;  %v2194_v3 = vrot.slane %v2076_v28, 2 }
 0x1aa   : > { %v4048_v1 = vpop.f32.mrf.mxu1  ;;  %v4943_v12 = vadd.f32 %v2418_v42, %v2251_v21  ;;  %v4945_v31 = vadd.f32 %v4077_v36, %v2249_v30 }
 0x1ab   : > { %2520 = vst [vmem:[#allocation2 + $0xb8] sm:$0x3f] %v2492_v20  ;;  %v2198_v0 = vrot.slane %v4048_v1, 2  ;;  %v4082_v39 = vpop.f32.mrf.mxu0 }
 0x1ac   : > { %v2079_v35 = vpop.f32.mrf.mxu1 }
 0x1ad   : > { %v2199_v14 = vsel %vm1226_vm3, %v2197_v26, %v2198_v0  ;;  %v2256_v2 = vadd.f32 %v2198_v0, %v2130_v46  ;;  %v2195_v48 = vrot.slane %v2079_v35, 2  ;;  %v2421_v63 = vpop.f32.mrf.mxu0 }
 0x1ae   : > { %v2255_v40 = vadd.f32 %v2199_v14, %v4894_v49  ;;  %v4051_v52 = vpop.f32.mrf.mxu1  ;;  %v2470_v47 = vld [vmem:[#allocation2 + $0xa8] sm:$0x3f]  ;;  %v2698_v14 = vld [vmem:[#allocation2 + $0x18] sm:$0x3f] }
 0x1af   : > { %2284 = vst [vmem:[#allocation2 + $0x10] sm:$0x3f] %v2256_v2  ;;  %v2196_v24 = vsel %vm1226_vm3, %v2194_v3, %v2195_v48  ;;  %v2254_v32 = vadd.f32 %v2195_v48, %v2128_v27  ;;  %v2498_v13 = vadd.f32 %v2470_v47, %v2421_v63  ;;  %v4085_v22 = vpop.f32.mrf.mxu0 }
 0x1b0   : > { %v2468_v15 = vld [vmem:[#allocation2 + $0x60] sm:$0x3f]  ;;  %v2253_v36 = vadd.f32 %v2196_v24, %v4897_v62  ;;  %v2092_v7 = vpop.f32.mrf.mxu1 }
 0x1b1   : > { %v2496_v55 = vadd.f32 %v4078_v44, %v2468_v15  ;;  %2282 = vst [vmem:[#allocation2 + $0xa0] sm:$0x3f] %v2254_v32  ;;  %2526 = vst [vmem:[#allocation2 + $0xa8] sm:$0x3f] %v2498_v13  ;;  %v2434_v33 = vpop.f32.mrf.mxu0  ;;  %v2200_v54 = vrot.slane %v2092_v7, 2 }
 0x1b2   : > { %v4052_v41 = vpop.f32.mrf.mxu1  ;;  %v4951_v43 = vadd.f32 %v2434_v33, %v2255_v40  ;;  %v4953_v49 = vadd.f32 %v4081_v5, %v2253_v36  ;;  %v2696_v13 = vld [vmem:[#allocation2] sm:$0x3f] }
 0x1b3   : > { %2524 = vst [vmem:[#allocation2 + $0x60] sm:$0x3f] %v2496_v55  ;;  %v4086_v19 = vpop.f32.mrf.mxu0 }
 0x1b4   : > { %v2095_v56 = vpop.f32.mrf.mxu1 }
 0x1b5   : > { %v2201_v25 = vrot.slane %v2095_v56, 2  ;;  %v2437_v57 = vpop.f32.mrf.mxu0 }
 0x1b6   : > { %v2474_v37 = vld [vmem:[#allocation2 + $0x10] sm:$0x3f]  ;;  %v4091_v61 = vpop.f32.mrf.mxu1 }
 0x1b7   : > { %v2202_v62 = vsel %vm1226_vm3, %v2200_v54, %v2201_v25  ;;  %v2258_v44 = vadd.f32 %v2201_v25, %v2132_v29  ;;  %v2502_v11 = vadd.f32 %v2474_v37, %v2437_v57  ;;  %v4125_v58 = vpop.f32.mrf.mxu0 }
 0x1b8   : > { %v2472_v21 = vld [vmem:[#allocation2 + $0xa0] sm:$0x3f]  ;;  %v2257_v59 = vadd.f32 %v2202_v62, %v4901_v60  ;;  %v2572_v45 = vpop.f32.mrf.mxu1 }
 0x1b9   : > { %v2500_v4 = vadd.f32 %v4082_v39, %v2472_v21  ;;  %2286 = vst [vmem:[#allocation2 + $0x70] sm:$0x3f] %v2258_v44  ;;  %2530 = vst [vmem:[#allocation2 + $0x10] sm:$0x3f] %v2502_v11  ;;  %v2916_v51 = vpop.f32.mrf.mxu0  ;;  %v2702_v44 = vld [vmem:[#allocation2 + $0x48] sm:$0x3f] }
 0x1ba   : > { %v4092_v8 = vpop.f32.mrf.mxu1  ;;  %v4957_v16 = vadd.f32 %v4085_v22, %v2257_v59 }
 0x1bb   : > { %2528 = vst [vmem:[#allocation2 + $0xa0] sm:$0x3f] %v2500_v4  ;;  %v4126_v5 = vpop.f32.mrf.mxu0 }
 0x1bc   : > { %v2574_v34 = vpop.f32.mrf.mxu1 }
 0x1bd   : > { %v2918_v30 = vpop.f32.mrf.mxu0  ;;  %v2700_v34 = vld [vmem:[#allocation2 + $0x68] sm:$0x3f] }
 0x1be   : > { %v4095_v28 = vpop.f32.mrf.mxu1 }
 0x1bf   : > { %v4129_v20 = vpop.f32.mrf.mxu0  ;;  %v2754_v39 = vrot.slane %v4095_v28, 1 }
 0x1c0   : > { %v2476_v42 = vld [vmem:[#allocation2 + $0x70] sm:$0x3f]  ;;  %v2584_v1 = vpop.f32.mrf.mxu1  ;;  %v3098_v46 = vrot.slane %v4129_v20, 2 }
 0x1c1   : > { %v2504_v26 = vadd.f32 %v4086_v19, %v2476_v42  ;;  %v2928_v0 = vpop.f32.mrf.mxu0  ;;  %v2751_v40 = vrot.slane %v2584_v1, 1 }
 0x1c2   : > { %v4096_v60 = vpop.f32.mrf.mxu1  ;;  %v3095_v48 = vrot.slane %v2928_v0, 2 }
 0x1c3   : > { %2532 = vst [vmem:[#allocation2 + $0x70] sm:$0x3f] %v2504_v26  ;;  %v2755_v35 = vrot.slane %v4096_v60, 1  ;;  %v4130_v3 = vpop.f32.mrf.mxu0 }
 0x1c4   : > { %v2587_v2 = vpop.f32.mrf.mxu1  ;;  %v3099_v63 = vrot.slane %v4130_v3, 2 }
 0x1c5   : > { %v2756_v27 = vsel %vm881_vm2, %v2754_v39, %v2755_v35  ;;  %v2824_v52 = vadd.f32 %v2755_v35, %v2698_v14  ;;  %v2752_v47 = vrot.slane %v2587_v2, 1  ;;  %v2931_v24 = vpop.f32.mrf.mxu0 }
 0x1c6   : > { %v2823_v32 = vadd.f32 %v2756_v27, %v4913_v9  ;;  %v4099_v22 = vpop.f32.mrf.mxu1  ;;  %v3100_v15 = vsel %vm1226_vm3, %v3098_v46, %v3099_v63  ;;  %v3096_v36 = vrot.slane %v2931_v24, 2 }
 0x1c7   : > { %2852 = vst [vmem:[#allocation2 + $0x18] sm:$0x3f] %v2824_v52  ;;  %v2753_v7 = vsel %vm881_vm2, %v2751_v40, %v2752_v47  ;;  %v2822_v55 = vadd.f32 %v2752_v47, %v2696_v13  ;;  %v4133_v33 = vpop.f32.mrf.mxu0  ;;  %v2760_v37 = vrot.slane %v4099_v22, 1  ;;  %v2706_v52 = vld [vmem:[#allocation2 + $0x58] sm:$0x3f] }
 0x1c8   : > { %v2821_v41 = vadd.f32 %v2753_v7, %v4905_v50  ;;  %v4970_v9 = vadd.f32 %v3100_v15, %v2823_v32  ;;  %v2600_v19 = vpop.f32.mrf.mxu1  ;;  %v3097_v56 = vsel %vm1226_vm3, %v3095_v48, %v3096_v36  ;;  %v3104_v29 = vrot.slane %v4133_v33, 2 }
 0x1c9   : > { %2850 = vst [vmem:[#allocation2] sm:$0x3f] %v2822_v55  ;;  %v2944_v54 = vpop.f32.mrf.mxu0  ;;  %v2757_v21 = vrot.slane %v2600_v19, 1 }
 0x1ca   : > { %3251 = vst [vmem:[%s4967_s19 + $0x10] sm:$0xff] %v4970_v9  ;;  %v4975_v25 = vadd.f32 %v3097_v56, %v2821_v41  ;;  %v4100_v57 = vpop.f32.mrf.mxu1  ;;  %v3101_v11 = vrot.slane %v2944_v54, 2  ;;  %v2704_v41 = vld [vmem:[#allocation2 + $0x88] sm:$0x3f] }
 0x1cb   : > { %v2761_v61 = vrot.slane %v4100_v57, 1  ;;  %v4134_v62 = vpop.f32.mrf.mxu0 }
 0x1cc   : > { %3249 = vst [vmem:[%s4967_s19] sm:$0xff] %v4975_v25  ;;  %v2603_v50 = vpop.f32.mrf.mxu1  ;;  %v3105_v58 = vrot.slane %v4134_v62, 2 }
 0x1cd   : > { %v2762_v59 = vsel %vm881_vm2, %v2760_v37, %v2761_v61  ;;  %v2828_v45 = vadd.f32 %v2761_v61, %v2702_v44  ;;  %v2758_v4 = vrot.slane %v2603_v50, 1  ;;  %v2947_v51 = vpop.f32.mrf.mxu0 }
 0x1ce   : > { %v3042_v8 = vld [vmem:[#allocation2 + $0x18] sm:$0x3f]  ;;  %v2827_v5 = vadd.f32 %v2762_v59, %v4921_v10  ;;  %v4103_v30 = vpop.f32.mrf.mxu1  ;;  %v3106_v28 = vsel %vm1226_vm3, %v3104_v29, %v3105_v58  ;;  %v3102_v20 = vrot.slane %v2947_v51, 2 }
 0x1cf   : > { %v3168_v42 = vadd.f32 %v3099_v63, %v3042_v8  ;;  %2856 = vst [vmem:[#allocation2 + $0x48] sm:$0x3f] %v2828_v45  ;;  %v2759_v1 = vsel %vm881_vm2, %v2757_v21, %v2758_v4  ;;  %v2826_v26 = vadd.f32 %v2758_v4, %v2700_v34  ;;  %v4137_v0 = vpop.f32.mrf.mxu0  ;;  %v2766_v40 = vrot.slane %v4103_v30, 1  ;;  %v2710_v30 = vld [vmem:[#allocation2 + $0xb8] sm:$0x3f] }
 0x1d0   : > { %v3040_v60 = vld [vmem:[#allocation2] sm:$0x3f]  ;;  %v2825_v46 = vadd.f32 %v2759_v1, %v4911_v23  ;;  %v4984_v39 = vadd.f32 %v3106_v28, %v2827_v5  ;;  %v2616_v35 = vpop.f32.mrf.mxu1  ;;  %v3103_v10 = vsel %vm1226_vm3, %v3101_v11, %v3102_v20  ;;  %v3110_v63 = vrot.slane %v4137_v0, 2 }
 0x1d1   : > { %3196 = vst [vmem:[#allocation2 + $0x18] sm:$0x3f] %v3168_v42  ;;  %v3166_v3 = vadd.f32 %v3096_v36, %v3040_v60  ;;  %2854 = vst [vmem:[#allocation2 + $0x68] sm:$0x3f] %v2826_v26  ;;  %v2960_v14 = vpop.f32.mrf.mxu0  ;;  %v2763_v13 = vrot.slane %v2616_v35, 1 }
 0x1d2   : > { %3255 = vst [vmem:[%s4967_s19 + $0x30] sm:$0xff] %v4984_v39  ;;  %v4989_v2 = vadd.f32 %v3103_v10, %v2825_v46  ;;  %v4104_v48 = vpop.f32.mrf.mxu1  ;;  %v3107_v24 = vrot.slane %v2960_v14, 2 }
 0x1d3   : > { %3194 = vst [vmem:[#allocation2] sm:$0x3f] %v3166_v3  ;;  %v2767_v27 = vrot.slane %v4104_v48, 1  ;;  %v4138_v23 = vpop.f32.mrf.mxu0  ;;  %v2708_v3 = vld [vmem:[#allocation2 + $0x90] sm:$0x3f] }
 0x1d4   : > { %3253 = vst [vmem:[%s4967_s19 + $0x20] sm:$0xff] %v4989_v2  ;;  %v2619_v47 = vpop.f32.mrf.mxu1  ;;  %v3111_v32 = vrot.slane %v4138_v23, 2 }
 0x1d5   : > { %v2768_v22 = vsel %vm881_vm2, %v2766_v40, %v2767_v27  ;;  %v2832_v15 = vadd.f32 %v2767_v27, %v2706_v52  ;;  %v2764_v36 = vrot.slane %v2619_v47, 1  ;;  %v4994_v7 = vpop.f32.mrf.mxu0 }
 0x1d6   : > { %v3046_v55 = vld [vmem:[#allocation2 + $0x48] sm:$0x3f]  ;;  %v2831_v33 = vadd.f32 %v2768_v22, %v4929_v38  ;;  %v4107_v19 = vpop.f32.mrf.mxu1  ;;  %v3112_v56 = vsel %vm1226_vm3, %v3110_v63, %v3111_v32  ;;  %v3108_v54 = vrot.slane %v4994_v7, 2 }
 0x1d7   : > { %v3172_v57 = vadd.f32 %v3105_v58, %v3046_v55  ;;  %2860 = vst [vmem:[#allocation2 + $0x58] sm:$0x3f] %v2832_v15  ;;  %v2765_v29 = vsel %vm881_vm2, %v2763_v13, %v2764_v36  ;;  %v2830_v37 = vadd.f32 %v2764_v36, %v2704_v41  ;;  %v4141_v61 = vpop.f32.mrf.mxu0  ;;  %v2772_v8 = vrot.slane %v4107_v19, 1 }
 0x1d8   : > { %v5000_v62 = vld [vmem:[#allocation2 + $0x18] sm:$0x3f]  ;;  %v3044_v44 = vld [vmem:[#allocation2 + $0x68] sm:$0x3f]  ;;  %v2829_v38 = vadd.f32 %v2765_v29, %v4919_v17  ;;  %v5003_v50 = vadd.f32 %v3112_v56, %v2831_v33  ;;  %v2632_v11 = vpop.f32.mrf.mxu1  ;;  %v3109_v21 = vsel %vm1226_vm3, %v3107_v24, %v3108_v54  ;;  %v3116_v17 = vrot.slane %v4141_v61, 2 }
 0x1d9   : > { %3252 = vst [vmem:[%s4967_s19 + $0x18] sm:$0x3f] %v5000_v62  ;;  %3200 = vst [vmem:[#allocation2 + $0x48] sm:$0x3f] %v3172_v57  ;;  %v3170_v58 = vadd.f32 %v3102_v20, %v3044_v44  ;;  %v2976_v59 = vpop.f32.mrf.mxu0  ;;  %v2769_v1 = vrot.slane %v2632_v11, 1 }
 0x1da   : > { %2858 = vst [vmem:[#allocation2 + $0x88] sm:$0x3f] %v2830_v37  ;;  %v5008_v45 = vld [vmem:[#allocation2] sm:$0x3f]  ;;  %3259 = vst [vmem:[%s4967_s19 + $0x50] sm:$0xff] %v5003_v50  ;;  %v5012_v4 = vadd.f32 %v3109_v21, %v2829_v38  ;;  %v4108_v51 = vpop.f32.mrf.mxu1  ;;  %v3113_v20 = vrot.slane %v2976_v59, 2 }
 0x1db   : > { %3250 = vst [vmem:[%s4967_s19 + $0x8] sm:$0x3f] %v5008_v45  ;;  %3198 = vst [vmem:[#allocation2 + $0x68] sm:$0x3f] %v3170_v58  ;;  %v2773_v5 = vrot.slane %v4108_v51, 1  ;;  %v4142_v34 = vpop.f32.mrf.mxu0 }
 0x1dc   : > { %3257 = vst [vmem:[%s4967_s19 + $0x40] sm:$0xff] %v5012_v4  ;;  %v2635_v28 = vpop.f32.mrf.mxu1  ;;  %v3117_v42 = vrot.slane %v4142_v34, 2  ;;  %v2714_v57 = vld [vmem:[#allocation2 + $0x60] sm:$0x3f]  ;;  %v2712_v51 = vld [vmem:[#allocation2 + $0x28] sm:$0x3f] }
 0x1dd   : > { %v2774_v26 = vsel %vm881_vm2, %v2772_v8, %v2773_v5  ;;  %v2836_v0 = vadd.f32 %v2773_v5, %v2710_v30  ;;  %v2770_v60 = vrot.slane %v2635_v28, 1  ;;  %v5019_v46 = vpop.f32.mrf.mxu0 }
 0x1de   : > { %v3050_v35 = vld [vmem:[#allocation2 + $0x58] sm:$0x3f]  ;;  %v2835_v10 = vadd.f32 %v2774_v26, %v4937_v6  ;;  %v4111_v14 = vpop.f32.mrf.mxu1  ;;  %v3118_v48 = vsel %vm1226_vm3, %v3116_v17, %v3117_v42  ;;  %v3114_v63 = vrot.slane %v5019_v46, 2 }
 0x1df   : > { %v3176_v40 = vadd.f32 %v3111_v32, %v3050_v35  ;;  %2864 = vst [vmem:[#allocation2 + $0xb8] sm:$0x3f] %v2836_v0  ;;  %v2771_v27 = vsel %vm881_vm2, %v2769_v1, %v2770_v60  ;;  %v2834_v23 = vadd.f32 %v2770_v60, %v2708_v3  ;;  %v4145_v52 = vpop.f32.mrf.mxu0  ;;  %v2778_v41 = vrot.slane %v4111_v14, 1 }
 0x1e0   : > { %v5025_v47 = vld [vmem:[#allocation2 + $0x48] sm:$0x3f]  ;;  %v2833_v6 = vadd.f32 %v2771_v27, %v4927_v18  ;;  %v5028_v13 = vadd.f32 %v3118_v48, %v2835_v10  ;;  %v2648_v22 = vpop.f32.mrf.mxu1  ;;  %v3115_v15 = vsel %vm1226_vm3, %v3113_v20, %v3114_v63  ;;  %v3122_v18 = vrot.slane %v4145_v52, 2 }
 0x1e1   : > { %v3048_v24 = vld [vmem:[#allocation2 + $0x88] sm:$0x3f]  ;;  %3256 = vst [vmem:[%s4967_s19 + $0x38] sm:$0x3f] %v5025_v47  ;;  %3204 = vst [vmem:[#allocation2 + $0x58] sm:$0x3f] %v3176_v40  ;;  %v2992_v36 = vpop.f32.mrf.mxu0 }
 0x1e2   : > { %v3174_v32 = vadd.f32 %v3108_v54, %v3048_v24  ;;  %2862 = vst [vmem:[#allocation2 + $0x90] sm:$0x3f] %v2834_v23  ;;  %v5033_v7 = vld [vmem:[#allocation2 + $0x68] sm:$0x3f]  ;;  %3263 = vst [vmem:[%s4967_s19 + $0x70] sm:$0xff] %v5028_v13  ;;  %v5037_v55 = vadd.f32 %v3115_v15, %v2833_v6  ;;  %v4112_v33 = vpop.f32.mrf.mxu1  ;;  %v3119_v29 = vrot.slane %v2992_v36, 2 }
 0x1e3   : > { %3254 = vst [vmem:[%s4967_s19 + $0x28] sm:$0x3f] %v5033_v7  ;;  %v2779_v19 = vrot.slane %v4112_v33, 1  ;;  %v4146_v56 = vpop.f32.mrf.mxu0  ;;  %v2775_v61 = vrot.slane %v2648_v22, 1  ;;  %v2718_v23 = vld [vmem:[#allocation2 + $0xa0] sm:$0x3f] }
 0x1e4   : > { %3202 = vst [vmem:[#allocation2 + $0x88] sm:$0x3f] %v3174_v32  ;;  %3261 = vst [vmem:[%s4967_s19 + $0x60] sm:$0xff] %v5037_v55  ;;  %v2651_v54 = vpop.f32.mrf.mxu1  ;;  %v3123_v37 = vrot.slane %v4146_v56, 2 }
 0x1e5   : > { %v2780_v44 = vsel %vm881_vm2, %v2778_v41, %v2779_v19  ;;  %v2840_v38 = vadd.f32 %v2779_v19, %v2714_v57  ;;  %v2776_v11 = vrot.slane %v2651_v54, 1  ;;  %v5044_v21 = vpop.f32.mrf.mxu0  ;;  %v2716_v41 = vld [vmem:[#allocation2 + $0xa8] sm:$0x3f] }
 0x1e6   : > { %v3054_v58 = vld [vmem:[#allocation2 + $0xb8] sm:$0x3f]  ;;  %v2839_v59 = vadd.f32 %v2780_v44, %v4945_v31  ;;  %v4115_v17 = vpop.f32.mrf.mxu1  ;;  %v3124_v8 = vsel %vm1226_vm3, %v3122_v18, %v3123_v37  ;;  %v3120_v5 = vrot.slane %v5044_v21, 2 }
 0x1e7   : > { %v3180_v34 = vadd.f32 %v3117_v42, %v3054_v58  ;;  %2868 = vst [vmem:[#allocation2 + $0x60] sm:$0x3f] %v2840_v38  ;;  %v2777_v30 = vsel %vm881_vm2, %v2775_v61, %v2776_v11  ;;  %v2838_v28 = vadd.f32 %v2776_v11, %v2712_v51  ;;  %v4149_v20 = vpop.f32.mrf.mxu0  ;;  %v2784_v48 = vrot.slane %v4115_v17, 1 }
 0x1e8   : > { %v5050_v1 = vld [vmem:[#allocation2 + $0x58] sm:$0x3f]  ;;  %v2837_v31 = vadd.f32 %v2777_v30, %v4935_v53  ;;  %v5053_v0 = vadd.f32 %v3124_v8, %v2839_v59  ;;  %v2664_v60 = vpop.f32.mrf.mxu1  ;;  %v3121_v46 = vsel %vm1226_vm3, %v3119_v29, %v3120_v5  ;;  %v3128_v53 = vrot.slane %v4149_v20, 2 }
 0x1e9   : > { %v3052_v26 = vld [vmem:[#allocation2 + $0x90] sm:$0x3f]  ;;  %3260 = vst [vmem:[%s4967_s19 + $0x58] sm:$0x3f] %v5050_v1  ;;  %3208 = vst [vmem:[#allocation2 + $0xb8] sm:$0x3f] %v3180_v34  ;;  %v3008_v35 = vpop.f32.mrf.mxu0 }
 0x1ea   : > { %v3178_v42 = vadd.f32 %v3114_v63, %v3052_v26  ;;  %2866 = vst [vmem:[#allocation2 + $0x28] sm:$0x3f] %v2838_v28  ;;  %3267 = vst [vmem:[%s4967_s19 + $0x90] sm:$0xff] %v5053_v0  ;;  %v5062_v3 = vadd.f32 %v3121_v46, %v2837_v31  ;;  %v4116_v14 = vpop.f32.mrf.mxu1  ;;  %v3125_v52 = vrot.slane %v3008_v35, 2  ;;  %v2781_v6 = vrot.slane %v2664_v60, 1 }
 0x1eb   : > { %v5058_v10 = vld [vmem:[#allocation2 + $0x88] sm:$0x3f]  ;;  %v2785_v40 = vrot.slane %v4116_v14, 1  ;;  %v4150_v27 = vpop.f32.mrf.mxu0  ;;  %v2722_v26 = vld [vmem:[#allocation2 + $0x70] sm:$0x3f] }
 0x1ec   : > { %3258 = vst [vmem:[%s4967_s19 + $0x48] sm:$0x3f] %v5058_v10  ;;  %3206 = vst [vmem:[#allocation2 + $0x90] sm:$0x3f] %v3178_v42  ;;  %v2667_v63 = vpop.f32.mrf.mxu1  ;;  %v3129_v24 = vrot.slane %v4150_v27, 2 }
 0x1ed   : > { %3265 = vst [vmem:[%s4967_s19 + $0x80] sm:$0xff] %v5062_v3  ;;  %v2786_v22 = vsel %vm881_vm2, %v2784_v48, %v2785_v40  ;;  %v2844_v15 = vadd.f32 %v2785_v40, %v2718_v23  ;;  %v2782_v32 = vrot.slane %v2667_v63, 1  ;;  %v3011_v36 = vpop.f32.mrf.mxu0  ;;  %v2720_v27 = vld [vmem:[#allocation2 + $0x10] sm:$0x3f] }
 0x1ee   : > { %v3058_v33 = vld [vmem:[#allocation2 + $0x60] sm:$0x3f]  ;;  %v2843_v18 = vadd.f32 %v2786_v22, %v4953_v49  ;;  %v4119_v19 = vpop.f32.mrf.mxu1  ;;  %v3130_v56 = vsel %vm1226_vm3, %v3128_v53, %v3129_v24  ;;  %v3126_v57 = vrot.slane %v3011_v36, 2 }
 0x1ef   : > { %v3184_v54 = vadd.f32 %v3123_v37, %v3058_v33  ;;  %2872 = vst [vmem:[#allocation2 + $0xa0] sm:$0x3f] %v2844_v15  ;;  %v2783_v29 = vsel %vm881_vm2, %v2781_v6, %v2782_v32  ;;  %v2842_v61 = vadd.f32 %v2782_v32, %v2716_v41  ;;  %v4153_v44 = vpop.f32.mrf.mxu0  ;;  %v2790_v30 = vrot.slane %v4119_v19, 1 }
 0x1f0   : > { %v5072_v38 = vld [vmem:[#allocation2 + $0xb8] sm:$0x3f]  ;;  %v2841_v21 = vadd.f32 %v2783_v29, %v4943_v12  ;;  %v5075_v49 = vadd.f32 %v3130_v56, %v2843_v18  ;;  %v2680_v58 = vpop.f32.mrf.mxu1  ;;  %v3127_v59 = vsel %vm1226_vm3, %v3125_v52, %v3126_v57  ;;  %v3134_v12 = vrot.slane %v4153_v44, 2 }
 0x1f1   : > { %v3056_v11 = vld [vmem:[#allocation2 + $0x28] sm:$0x3f]  ;;  %3264 = vst [vmem:[%s4967_s19 + $0x78] sm:$0x3f] %v5072_v38  ;;  %3212 = vst [vmem:[#allocation2 + $0x60] sm:$0x3f] %v3184_v54  ;;  %v3024_v51 = vpop.f32.mrf.mxu0 }
 0x1f2   : > { %v3182_v37 = vadd.f32 %v3120_v5, %v3056_v11  ;;  %2870 = vst [vmem:[#allocation2 + $0xa8] sm:$0x3f] %v2842_v61  ;;  %3271 = vst [vmem:[%s4967_s19 + $0xb0] sm:$0xff] %v5075_v49  ;;  %v5084_v8 = vadd.f32 %v3127_v59, %v2841_v21  ;;  %v4120_v34 = vpop.f32.mrf.mxu1  ;;  %v3131_v31 = vrot.slane %v3024_v51, 2  ;;  %v2787_v46 = vrot.slane %v2680_v58, 1 }
 0x1f3   : > { %v5080_v17 = vld [vmem:[#allocation2 + $0x90] sm:$0x3f]  ;;  %v2791_v28 = vrot.slane %v4120_v34, 1  ;;  %v4154_v20 = vpop.f32.mrf.mxu0 }
 0x1f4   : > { %3262 = vst [vmem:[%s4967_s19 + $0x68] sm:$0x3f] %v5080_v17  ;;  %3210 = vst [vmem:[#allocation2 + $0x28] sm:$0x3f] %v3182_v37  ;;  %v2683_v5 = vpop.f32.mrf.mxu1  ;;  %v3135_v60 = vrot.slane %v4154_v20, 2 }
 0x1f5   : > { %3269 = vst [vmem:[%s4967_s19 + $0xa0] sm:$0xff] %v5084_v8  ;;  %v2792_v42 = vsel %vm881_vm2, %v2790_v30, %v2791_v28  ;;  %v2848_v35 = vadd.f32 %v2791_v28, %v2722_v26  ;;  %v2788_v14 = vrot.slane %v2683_v5, 1  ;;  %v3027_v53 = vpop.f32.mrf.mxu0 }
 0x1f6   : > { %v3062_v48 = vld [vmem:[#allocation2 + $0xa0] sm:$0x3f]  ;;  %v2847_v40 = vadd.f32 %v2792_v42, %v4957_v16  ;;  %v3136_v23 = vsel %vm1226_vm3, %v3134_v12, %v3135_v60  ;;  %v3132_v63 = vrot.slane %v3027_v53, 2 }
 0x1f7   : > { %v3188_v52 = vadd.f32 %v3129_v24, %v3062_v48  ;;  %2876 = vst [vmem:[#allocation2 + $0x70] sm:$0x3f] %v2848_v35  ;;  %v2789_v6 = vsel %vm881_vm2, %v2787_v46, %v2788_v14  ;;  %v2846_v22 = vadd.f32 %v2788_v14, %v2720_v27 }
 0x1f8   : > { %v5094_v15 = vld [vmem:[#allocation2 + $0x60] sm:$0x3f]  ;;  %v2845_v36 = vadd.f32 %v2789_v6, %v4951_v43  ;;  %v5097_v33 = vadd.f32 %v3136_v23, %v2847_v40  ;;  %v3133_v16 = vsel %vm1226_vm3, %v3131_v31, %v3132_v63 }
 0x1f9   : > { %v3060_v32 = vld [vmem:[#allocation2 + $0xa8] sm:$0x3f]  ;;  %3268 = vst [vmem:[%s4967_s19 + $0x98] sm:$0x3f] %v5094_v15  ;;  %3216 = vst [vmem:[#allocation2 + $0xa0] sm:$0x3f] %v3188_v52 }
 0x1fa   : > { %v3186_v24 = vadd.f32 %v3126_v57, %v3060_v32  ;;  %2874 = vst [vmem:[#allocation2 + $0x10] sm:$0x3f] %v2846_v22  ;;  %3275 = vst [vmem:[%s4967_s19 + $0xd0] sm:$0xff] %v5097_v33  ;;  %v5106_v41 = vadd.f32 %v3133_v16, %v2845_v36 }
 0x1fb   : > { %v5102_v18 = vld [vmem:[#allocation2 + $0x28] sm:$0x3f] }
 0x1fc   : > { %3266 = vst [vmem:[%s4967_s19 + $0x88] sm:$0x3f] %v5102_v18  ;;  %3214 = vst [vmem:[#allocation2 + $0xa8] sm:$0x3f] %v3186_v24 }
 0x1fd   : > { %3273 = vst [vmem:[%s4967_s19 + $0xc0] sm:$0xff] %v5106_v41 }
 0x1fe   : > { %v3066_v43 = vld [vmem:[#allocation2 + $0x70] sm:$0x3f] }
 0x1ff   : > { %v3192_v19 = vadd.f32 %v3135_v60, %v3066_v43 }
 0x200   : > { %v5112_v56 = vld [vmem:[#allocation2 + $0xa0] sm:$0x3f] }
 0x201   : > { %v3064_v57 = vld [vmem:[#allocation2 + $0x10] sm:$0x3f]  ;;  %3272 = vst [vmem:[%s4967_s19 + $0xb8] sm:$0x3f] %v5112_v56  ;;  %3220 = vst [vmem:[#allocation2 + $0x70] sm:$0x3f] %v3192_v19 }
 0x202   : > { %v3190_v54 = vadd.f32 %v3132_v63, %v3064_v57 }
 0x203   : > { %v5116_v29 = vld [vmem:[#allocation2 + $0xa8] sm:$0x3f] }
 0x204   : > { %3270 = vst [vmem:[%s4967_s19 + $0xa8] sm:$0x3f] %v5116_v29  ;;  %3218 = vst [vmem:[#allocation2 + $0x10] sm:$0x3f] %v3190_v54 }
 0x208   : > { %v5120_v61 = vld [vmem:[#allocation2 + $0x70] sm:$0x3f]  ;;  %3280 = sbr.rel (%p3688_p4) target bundleno = 527 (0x20f), region = 32 }
 0x209   : > { %3276 = vst [vmem:[%s4967_s19 + $0xd8] sm:$0x3f] %v5120_v61 }
 0x20b   : > { %v5124_v44 = vld [vmem:[#allocation2 + $0x10] sm:$0x3f] }
 0x20c   : > { %3274 = vst [vmem:[%s4967_s19 + $0xc8] sm:$0x3f] %v5124_v44 }
 0x20d   : > { %v4259_v11 = vmov 0.0  }
 0x20e   : > { %3281 = vst [vmem:[#allocation3] sm:$0x1] %v4259_v11  ;;  %3282 = vst [vmem:[#allocation5] sm:$0x1] %v4259_v11 }
 0x20f PF: > { %v3284_v21 = vsel %vm1226_vm3, %v5008_v45, 0.0  ;;  %v3287_v59 = vsel %vm1226_vm3, %v5000_v62, 0.0  ;;  %v3290_v34 = vsel %vm1226_vm3, %v5033_v7, 0.0  ;;  %v3335_v30 = vmul.f32 %v5008_v45, %v5008_v45  ;;  %s4260_s20 = smov [#allocation3]   ;;  %p4176_p5 = scmp.eq.s32.totalorder %s4293_s16, 1 }
 0x210   : > { %v3285_v58 = vadd.f32 %v3284_v21, %v4975_v25  ;;  %v3334_v20 = vmul.f32 %v4975_v25, %v4975_v25  ;;  %v3293_v26 = vsel %vm1226_vm3, %v5025_v47, 0.0  ;;  %v3337_v5 = vmul.f32 %v5000_v62, %v5000_v62  ;;  %s3426_s21 = sshll.u32 %s4260_s20, 4  ;;  %s3427_s21 = int_to_ptr.vmem [resolvable:$true] %s3426_s21 }
 0x211   : > { %v3336_v60 = vmul.f32 %v4970_v9, %v4970_v9  ;;  %v3362_v46 = vsel %vm1226_vm3, %v3335_v30, 0.0  ;;  %v3296_v45 = vsel %vm1226_vm3, %v5058_v10, 0.0  ;;  %v3339_v25 = vmul.f32 %v5033_v7, %v5033_v7  ;;  %s4193_s22 = scalar_lea.vmem %s3427_s21, 16  ;;  %s4199_s23 = scalar_lea.vmem %s3427_s21, 32 }
 0x212   : > { %v3286_v37 = vadd.f32 %v3285_v58, %v4970_v9  ;;  %v3363_v35 = vadd.f32 %v3362_v46, %v3334_v20  ;;  %v3365_v14 = vsel %vm1226_vm3, %v3337_v5, 0.0  ;;  %v3338_v62 = vmul.f32 %v4989_v2, %v4989_v2  ;;  %p4194_p6 = scmp.ne.s32.totalorder %s3427_s21, %s4193_s22  ;;  %p4200_p9 = scmp.lt.s32.totalorder %s3427_s21, %s3427_s21 }
 0x213   : > { %v3299_v27 = vsel %vm1226_vm3, %v5050_v1, 0.0  ;;  %v3341_v23 = vmul.f32 %v5025_v47, %v5025_v47  ;;  %v3368_v63 = vsel %vm1226_vm3, %v3339_v25, 0.0  ;;  %v3340_v52 = vmul.f32 %v4984_v39, %v4984_v39  ;;  %p4201_p10 = scmp.lt.s32.totalorder %s4199_s23, %s4193_s22 }
 0x214   : > { %v3288_v51 = vadd.f32 %v3287_v59, %v3286_v37  ;;  %v3364_v48 = vadd.f32 %v3363_v35, %v3336_v60  ;;  %v3343_v36 = vmul.f32 %v5058_v10, %v5058_v10  ;;  %v3342_v24 = vmul.f32 %v5012_v4, %v5012_v4  ;;  %p4195_p7 = pnand %p4194_p6, %p4176_p5 }
 0x215   : > { %v3371_v16 = vsel %vm1226_vm3, %v3341_v23, 0.0  ;;  %v3345_v54 = vmul.f32 %v5050_v1, %v5050_v1  ;;  %v3344_v21 = vmul.f32 %v5003_v50, %v5003_v50  ;;  %v3351_v35 = vmul.f32 %v5102_v18, %v5102_v18  ;;  %p4202_p11 = por %p4201_p10, %p4200_p9 }
 0x216   : > { %v3289_v12 = vadd.f32 %v3288_v51, %v4989_v2  ;;  %v3366_v9 = vadd.f32 %v3365_v14, %v3364_v48  ;;  %v3302_v2 = vsel %vm1226_vm3, %v5080_v17, 0.0  ;;  %v3374_v11 = vsel %vm1226_vm3, %v3343_v36, 0.0  ;;  %p4196_p8 = pneg %p4195_p7 }
 0x217   : > { %v3347_v51 = vmul.f32 %v5080_v17, %v5080_v17  ;;  %v3350_v25 = vmul.f32 %v5062_v3, %v5062_v3  ;;  %v3353_v48 = vmul.f32 %v5094_v15, %v5094_v15  ;;  %v3357_v36 = vmul.f32 %v5112_v56, %v5112_v56 }
 0x218   : > { %v3291_v28 = vadd.f32 %v3290_v34, %v3289_v12  ;;  %v3367_v6 = vadd.f32 %v3366_v9, %v3338_v62  ;;  %v3377_v34 = vsel %vm1226_vm3, %v3345_v54, 0.0  ;;  %v3346_v12 = vmul.f32 %v5037_v55, %v5037_v55  ;;  %p4203_p12 = pnand %p4202_p11, %p4196_p8 }
 0x219   : > { %v3380_v5 = vsel %vm1226_vm3, %v3347_v51, 0.0  ;;  %v3352_v9 = vmul.f32 %v5053_v0, %v5053_v0  ;;  %v3358_v54 = vmul.f32 %v5106_v41, %v5106_v41 }
 0x21a   : > { %v3292_v31 = vadd.f32 %v3291_v28, %v4984_v39  ;;  %v3369_v32 = vadd.f32 %v3368_v63, %v3367_v6  ;;  %v3305_v39 = vsel %vm1226_vm3, %v5072_v38, 0.0  ;;  %v3354_v6 = vmul.f32 %v5084_v8, %v5084_v8 }
 0x21c   : > { %v3294_v42 = vadd.f32 %v3293_v26, %v3292_v31  ;;  %v3370_v43 = vadd.f32 %v3369_v32, %v3340_v52  ;;  %v3349_v26 = vmul.f32 %v5072_v38, %v5072_v38  ;;  %v3348_v31 = vmul.f32 %v5028_v13, %v5028_v13 }
 0x21d   : > { %v3389_v52 = vsel %vm1226_vm3, %v3353_v48, 0.0 }
 0x21e   : > { %v3295_v53 = vadd.f32 %v3294_v42, %v5012_v4  ;;  %v3372_v57 = vadd.f32 %v3371_v16, %v3370_v43  ;;  %v3308_v4 = vsel %vm1226_vm3, %v5102_v18, 0.0 }
 0x220   : > { %v3297_v40 = vadd.f32 %v3296_v45, %v3295_v53  ;;  %v3373_v58 = vadd.f32 %v3372_v57, %v3342_v24  ;;  %v3383_v45 = vsel %vm1226_vm3, %v3349_v26, 0.0  ;;  %v3395_v57 = vsel %vm1226_vm3, %v3357_v36, 0.0 }
 0x222   : > { %v3298_v7 = vadd.f32 %v3297_v40, %v5003_v50  ;;  %v3375_v37 = vadd.f32 %v3374_v11, %v3373_v58  ;;  %v3311_v50 = vsel %vm1226_vm3, %v5094_v15, 0.0  ;;  %v3386_v40 = vsel %vm1226_vm3, %v3351_v35, 0.0 }
 0x224   : > { %v3300_v22 = vadd.f32 %v3299_v27, %v3298_v7  ;;  %v3376_v30 = vadd.f32 %v3375_v37, %v3344_v21  ;;  %v3355_v7 = vmul.f32 %v5116_v29, %v5116_v29  ;;  %v3361_v21 = vmul.f32 %v5120_v61, %v5120_v61 }
 0x226   : > { %v3301_v47 = vadd.f32 %v3300_v22, %v5037_v55  ;;  %v3378_v20 = vadd.f32 %v3377_v34, %v3376_v30  ;;  %v3314_v55 = vsel %vm1226_vm3, %v5116_v29, 0.0  ;;  %v3392_v16 = vsel %vm1226_vm3, %v3355_v7, 0.0 }
 0x227   : > { %v3401_v51 = vsel %vm1226_vm3, %v3361_v21, 0.0 }
 0x228   : > { %v3303_v19 = vadd.f32 %v3302_v2, %v3301_v47  ;;  %v3379_v60 = vadd.f32 %v3378_v20, %v3346_v12  ;;  %v3356_v47 = vmul.f32 %v5075_v49, %v5075_v49 }
 0x22a   : > { %v3304_v10 = vadd.f32 %v3303_v19, %v5028_v13  ;;  %v3381_v42 = vadd.f32 %v3380_v5, %v3379_v60  ;;  %v3317_v13 = vsel %vm1226_vm3, %v5112_v56, 0.0 }
 0x22c   : > { %v3306_v59 = vadd.f32 %v3305_v39, %v3304_v10  ;;  %v3382_v14 = vadd.f32 %v3381_v42, %v3348_v31 }
 0x22e   : > { %v3307_v1 = vadd.f32 %v3306_v59, %v5062_v3  ;;  %v3384_v62 = vadd.f32 %v3383_v45, %v3382_v14  ;;  %v3320_v3 = vsel %vm1226_vm3, %v5124_v44, 0.0  ;;  %v3360_v59 = vmul.f32 %v5097_v33, %v5097_v33 }
 0x230   : > { %v3309_v28 = vadd.f32 %v3308_v4, %v3307_v1  ;;  %v3385_v27 = vadd.f32 %v3384_v62, %v3350_v25  ;;  %v3283_v1 = vld [vmem:[#allocation3] sm:$0x1] }
 0x232   : > { %v3310_v17 = vadd.f32 %v3309_v28, %v5053_v0  ;;  %v3387_v63 = vadd.f32 %v3386_v40, %v3385_v27  ;;  %v3323_v0 = vsel %vm1226_vm3, %v5120_v61, 0.0 }
 0x234   : > { %v3312_v46 = vadd.f32 %v3311_v50, %v3310_v17  ;;  %v3388_v22 = vadd.f32 %v3387_v63, %v3352_v9 }
 0x236   : > { %v3313_v38 = vadd.f32 %v3312_v46, %v5084_v8  ;;  %v3390_v2 = vadd.f32 %v3389_v52, %v3388_v22  ;;  %v3359_v8 = vmul.f32 %v5124_v44, %v5124_v44 }
 0x238   : > { %v3315_v53 = vadd.f32 %v3314_v55, %v3313_v38  ;;  %v3391_v24 = vadd.f32 %v3390_v2, %v3354_v6 }
 0x23a   : > { %v3316_v18 = vadd.f32 %v3315_v53, %v5075_v49  ;;  %v3393_v19 = vadd.f32 %v3392_v16, %v3391_v24  ;;  %v3398_v49 = vsel %vm1226_vm3, %v3359_v8, 0.0 }
 0x23c   : > { %v3318_v23 = vadd.f32 %v3317_v13, %v3316_v18  ;;  %v3394_v56 = vadd.f32 %v3393_v19, %v3356_v47 }
 0x23e   : > { %v3319_v15 = vadd.f32 %v3318_v23, %v5106_v41  ;;  %v3396_v10 = vadd.f32 %v3395_v57, %v3394_v56 }
 0x240   : > { %v3321_v32 = vadd.f32 %v3320_v3, %v3319_v15  ;;  %v3397_v44 = vadd.f32 %v3396_v10, %v3358_v54 }
 0x242   : > { %v3322_v29 = vadd.f32 %v3321_v32, %v5097_v33  ;;  %v3399_v4 = vadd.f32 %v3398_v49, %v3397_v44 }
 0x244   : > { %v3324_v43 = vadd.f32 %v3323_v0, %v3322_v29  ;;  %v3400_v34 = vadd.f32 %v3399_v4, %v3360_v59 }
 0x246   : > { %v3325_v39 = vrot.slane %v3324_v43, 4  ;;  %v3402_v30 = vadd.f32 %v3401_v51, %v3400_v34 }
 0x248   : > { %v3326_v11 = vadd.f32 %v3325_v39, %v3324_v43  ;;  %v3403_v28 = vrot.slane %v3402_v30, 4 }
 0x24a   : > { %v3327_v58 = vrot.slane %v3326_v11, 2  ;;  %v3404_v20 = vadd.f32 %v3403_v28, %v3402_v30 }
 0x24c   : > { %v3328_v37 = vadd.f32 %v3327_v58, %v3326_v11 }
 0x24e   : > { %v3329_v41 = vrot.slane %v3328_v37, 1 }
 0x250   : > { %v3330_v12 = vadd.f32 %v3329_v41, %v3328_v37 }
 0x252   : > { %v3331_v61 = vadd.f32 %v3330_v12, %v3283_v1 }
 0x254   : > { %3332 = vst [vmem:[#allocation3] sm:$0x1] %v3331_v61 }
 0x255   : > { %4206 = shalt.err (!%p4203_p12)
}
 0x256   : > { %4169 = dma.vmem_to_hbm [thread:$0]  (%p4176_p5), %s3427_s21, 16, %s5270_s3, [#allocation4]   ;;  %v3405_v33 = vrot.slane %v3404_v20, 2  ;;  %v3333_v5 = vld [vmem:[#allocation5] sm:$0x1] }
 0x257   : > { %s4261_s26 = smov [#allocation5]  }
 0x258   : > { %v3406_v50 = vadd.f32 %v3405_v33, %v3404_v20  ;;  %s3437_s27 = sshll.u32 %s4261_s26, 4  ;;  %s3438_s27 = int_to_ptr.vmem [resolvable:$true] %s3437_s27 }
 0x259   : > { %s4217_s28 = scalar_lea.vmem %s3438_s27, 16  ;;  %s4223_s29 = scalar_lea.vmem %s3438_s27, 32 }
 0x25a   : > { %v3407_v26 = vrot.slane %v3406_v50, 1  ;;  %p4218_p13 = scmp.ne.s32.totalorder %s3438_s27, %s4217_s28  ;;  %p4224_p2 = scmp.lt.s32.totalorder %s3438_s27, %s3438_s27 }
 0x25b   : > { %p4225_p3 = scmp.lt.s32.totalorder %s4223_s29, %s4217_s28 }
 0x25c   : > { %v3408_v17 = vadd.f32 %v3407_v26, %v3406_v50  ;;  %p4219_p0 = pnand %p4218_p13, %p4176_p5 }
 0x25d   : > { %p4226_p4 = por %p4225_p3, %p4224_p2 }
 0x25e   : > { %v3409_v31 = vadd.f32 %v3408_v17, %v3333_v5  ;;  %p4220_p1 = pneg %p4219_p0 }
 0x260   : > { %3410 = vst [vmem:[#allocation5] sm:$0x1] %v3409_v31  ;;  %p4227_p6 = pnand %p4226_p4, %p4220_p1 }
 0x262   : > { %4230 = shalt.err (!%p4227_p6)
}
 0x263   : > { %4171 = dma.vmem_to_hbm [thread:$0]  (%p4176_p5), %s3438_s27, 16, %s5271_s4, [#allocation6]  }
 0x264   : > { %4246 = dma.done.wait (%p4176_p5), [#allocation4], 16  }
 0x265   : > { %4248 = vsyncadd (%p4176_p5), [#allocation4], 4294967280 }
 0x266   : > { %4250 = dma.done.wait (%p4176_p5), [#allocation6], 16  }
 0x267   : > { %4252 = vsyncadd (%p4176_p5), [#allocation6], 4294967280 }
 0x268 PF: > { %s17_s15 = sadd.s32 1, %s4255_s15  }
 0x269   : > { %p14_p7 = scmp.ge.s32.totalorder %s17_s15, 4  }
 0x26b   :  { %16 = sbr.rel (!%p14_p7) target bundleno = 2 (0x2), region = 87 }
 0x270   :  { %3462 = vsyncpa [#allocation4], 1 }
 0x271   :  { %3464 = vsyncpa [#allocation4 + $0x1], 1 }
 0x272   :  { %3465 = vsyncpa [#allocation6], 1 }

</bundles_post_ra>
